<compile_context>
chip_gen: v5e
topology: v5e:2x2
jax: 0.10.0
libtpu: 0.0.40
codegen_flags: <defaults>
</compile_context>

<pallas_src>
import functools

import jax
import jax.numpy as jnp
from jax.experimental import pallas as pl
from jax.experimental.pallas import tpu as pltpu

LANE = 128
SUBLANE = 8


def _round_up(x, m):
    return (x + m - 1) // m * m


def _num_tensorcores():
    """Best-effort chip detection: v7x has 2 TensorCores/chip, v5e/v6e have 1."""
    try:
        kind = getattr(jax.devices()[0], "device_kind", "").lower()
        if "v7" in kind or "7x" in kind:
            return 2
    except Exception:
        pass
    return 1


def nbvae_kernel(x_ref, eps_ref,
                 we1_ref, be1_ref,
                 we2_ref, be2_ref,
                 wd1_ref, bd1_ref,
                 wd2_ref, bd2_ref,
                 out_ref, *, data_dim, latent_dim):
    D = data_dim
    L = latent_dim

    # MXU operands in bf16, accumulation + all elementwise math in f32.
    x = x_ref[...].astype(jnp.bfloat16)

    # ----- encoder layer 1 (hidden padded to 128 lanes) -----
    h1 = jnp.dot(x, we1_ref[...], preferred_element_type=jnp.float32) + be1_ref[...]
    h1 = jnp.maximum(h1, 0.0)

    # ----- fused mu / log_var projection -----
    # we2/be2 columns are pre-placed at lane offset D, so h2 already carries
    # mu at lanes [D, D+L) and log_var at [D+L, D+2L); zeros elsewhere.
    h2 = jnp.dot(h1.astype(jnp.bfloat16), we2_ref[...],
                 preferred_element_type=jnp.float32) + be2_ref[...]
    mu = h2[:, D:D + L]
    log_var = h2[:, D + L:D + 2 * L]

    # ----- reparameterize (f32) -----
    z = mu + eps_ref[...] * jnp.exp(0.5 * log_var)

    # ----- decoder -----
    d1 = jnp.dot(z.astype(jnp.bfloat16), wd1_ref[...],
                 preferred_element_type=jnp.float32) + bd1_ref[...]
    d1 = jnp.maximum(d1, 0.0)
    logits = jnp.dot(d1.astype(jnp.bfloat16), wd2_ref[...],
                     preferred_element_type=jnp.float32) + bd2_ref[...]

    # ----- NBLayer forward (scaling_type='library' -> sigmoid) + packing -----
    # Single lane-dense slab: [x_hat(0:D) | mu(D:D+L) | log_var(D+L:D+2L) | pad]
    x_hat = jax.nn.sigmoid(logits)
    lane = jax.lax.broadcasted_iota(jnp.int32, out_ref.shape, 1)
    in_mulv = (lane >= D) & (lane < D + 2 * L)
    out_ref[...] = jnp.where(in_mulv, h2, x_hat)


def nbvae_forward_packed(x, eps, params, *, block_b=512):
    """Returns the packed (Bp, SLAB) slab: [x_hat | mu | log_var | pad]."""
    B, D = x.shape
    L = eps.shape[1]
    Hp = params["we1"].shape[1]          # hidden padded to 128
    SLAB = params["wd2"].shape[1]        # round_up(D + 2L, 128)
    assert params["we2"].shape[1] == SLAB

    # Grid choice per generation: 1 block on single-TC chips when B is small,
    # an even number of blocks on dual-TC v7x so both cores get work.
    tc = _num_tensorcores()
    n_blocks = max(tc, pl.cdiv(B, block_b))
    if tc > 1 and n_blocks % tc != 0:
        n_blocks += tc - (n_blocks % tc)
    TB = _round_up(pl.cdiv(B, n_blocks), SUBLANE)
    Bp = TB * n_blocks
    if Bp != B:
        x = jnp.pad(x, ((0, Bp - B), (0, 0)))
        eps = jnp.pad(eps, ((0, Bp - B), (0, 0)))

    kernel = functools.partial(nbvae_kernel, data_dim=D, latent_dim=L)

    def batch_spec(shape):
        return pl.BlockSpec(shape, lambda i: (i, 0))

    def const_spec(shape):
        return pl.BlockSpec(shape, lambda i: (0, 0))   # weights stay resident

    in_specs = [
        batch_spec((TB, D)),      # x
        batch_spec((TB, L)),      # eps
        const_spec((D, Hp)),      # we1
        const_spec((1, Hp)),      # be1
        const_spec((Hp, SLAB)),   # we2 (mu|lv cols placed at offset D)
        const_spec((1, SLAB)),    # be2
        const_spec((L, Hp)),      # wd1
        const_spec((1, Hp)),      # bd1
        const_spec((Hp, SLAB)),   # wd2
        const_spec((1, SLAB)),    # bd2
    ]
    out_specs = pl.BlockSpec((TB, SLAB), lambda i: (i, 0))
    out_shape = jax.ShapeDtypeStruct((Bp, SLAB), jnp.float32)

    flops = 2 * Bp * (D * Hp + Hp * SLAB + L * Hp + Hp * SLAB)
    transcendentals = Bp * (L + SLAB)
    weight_bytes = sum(int(v.size) * v.dtype.itemsize for v in params.values())
    bytes_accessed = (int(x.size) * x.dtype.itemsize
                      + int(eps.size) * eps.dtype.itemsize
                      + weight_bytes
                      + Bp * SLAB * 4)

    slab = pl.pallas_call(
        kernel,
        out_shape=out_shape,
        grid_spec=pltpu.PrefetchScalarGridSpec(
            num_scalar_prefetch=0,
            grid=(n_blocks,),
            in_specs=in_specs,
            out_specs=out_specs,
        ),
        compiler_params=pltpu.CompilerParams(
            dimension_semantics=("parallel",),        # batch tiles split across TCs
            vmem_limit_bytes=32 * 1024 * 1024,
        ),
        cost_estimate=pl.CostEstimate(
            flops=flops,
            transcendentals=transcendentals,
            bytes_accessed=bytes_accessed,
        ),
    )(x, eps,
      params["we1"], params["be1"],
      params["we2"], params["be2"],
      params["wd1"], params["bd1"],
      params["wd2"], params["bd2"])
    return slab, B, D, L


def nbvae_forward(x, eps, params, *, block_b=512):
    """Convenience wrapper that slices the packed slab into (x_hat, mu, log_var)."""
    slab, B, D, L = nbvae_forward_packed(x, eps, params, block_b=block_b)
    x_hat = slab[:B, :D]
    mu = slab[:B, D:D + L]
    log_var = slab[:B, D + L:D + 2 * L]
    return x_hat, mu, log_var


def init_params(key, latent=8, hidden=32, data=64):
    """Synthetic params in (in, out) layout.  Hidden dim zero-padded to 128;
    we2/be2 columns placed at lane offset `data` so mu|log_var land directly in
    the x_hat slab's padding lanes; weights stored bf16, biases f32."""
    ks = jax.random.split(key, 4)

    def lin(k, fan_in, fan_out):
        bound = 1.0 / jnp.sqrt(fan_in)
        kw, kb = jax.random.split(k)
        w = jax.random.uniform(kw, (fan_in, fan_out), jnp.float32, -bound, bound)
        b = jax.random.uniform(kb, (1, fan_out), jnp.float32, -bound, bound)
        return w, b

    # encoder: Linear(data, hidden), ReLU, Linear(hidden, 2*latent)  (fused mu|lv)
    we1, be1 = lin(ks[0], data, hidden)
    we2, be2 = lin(ks[1], hidden, 2 * latent)
    # decoder: Linear(latent, hidden), ReLU, Linear(hidden, data)
    wd1, bd1 = lin(ks[2], latent, hidden)
    wd2, bd2 = lin(ks[3], hidden, data)

    Hp = _round_up(hidden, LANE)
    SLAB = _round_up(data + 2 * latent, LANE)

    def place(a, rows, cols, col_off=0):
        out = jnp.zeros((rows, cols), a.dtype)
        return out.at[:a.shape[0], col_off:col_off + a.shape[1]].set(a)

    return dict(
        we1=place(we1, data, Hp).astype(jnp.bfloat16),
        be1=place(be1, 1, Hp),
        we2=place(we2, Hp, SLAB, col_off=data).astype(jnp.bfloat16),
        be2=place(be2, 1, SLAB, col_off=data),
        wd1=place(wd1, latent, Hp).astype(jnp.bfloat16),
        bd1=place(bd1, 1, Hp),
        wd2=place(wd2, Hp, SLAB).astype(jnp.bfloat16),
        bd2=place(bd2, 1, SLAB),
    )


def nbvae_reference(x, eps, p, data_dim, latent_dim):
    """Pure-JAX reference with identical numerics (bf16 MXU operands, f32 acc)."""
    D, L = data_dim, latent_dim
    xb = x.astype(jnp.bfloat16)
    h1 = jnp.maximum(
        jnp.dot(xb, p["we1"], preferred_element_type=jnp.float32) + p["be1"], 0.0)
    h2 = jnp.dot(h1.astype(jnp.bfloat16), p["we2"],
                 preferred_element_type=jnp.float32) + p["be2"]
    mu, log_var = h2[:, D:D + L], h2[:, D + L:D + 2 * L]
    z = mu + eps * jnp.exp(0.5 * log_var)
    d1 = jnp.maximum(
        jnp.dot(z.astype(jnp.bfloat16), p["wd1"],
                preferred_element_type=jnp.float32) + p["bd1"], 0.0)
    logits = jnp.dot(d1.astype(jnp.bfloat16), p["wd2"],
                     preferred_element_type=jnp.float32) + p["bd2"]
    x_hat = jax.nn.sigmoid(logits)[:, :D]
    return x_hat, mu, log_var


if __name__ == "__main__":
    B, LATENT, HIDDEN, DATA = 256, 8, 32, 64

    key = jax.random.PRNGKey(0)
    kx, keps, kp = jax.random.split(key, 3)

    # Synthetic count-like (non-negative) input data, shape (batch, n_genes).
    x = jax.random.poisson(kx, 3.0, (B, DATA)).astype(jnp.float32)
    # eps for reparameterization (torch.randn_like equivalent), passed in
    # explicitly so the kernel is deterministic.
    eps = jax.random.normal(keps, (B, LATENT), jnp.float32)

    params = init_params(kp, latent=LATENT, hidden=HIDDEN, data=DATA)

    x_hat, mu, log_var = nbvae_forward(x, eps, params, block_b=512)
    jax.block_until_ready((x_hat, mu, log_var))

    # correctness check against pure-JAX reference with matching numerics
    r_xhat, r_mu, r_lv = nbvae_reference(x, eps, params, DATA, LATENT)
    assert x_hat.shape == (B, DATA)
    assert mu.shape == (B, LATENT) and log_var.shape == (B, LATENT)
    assert jnp.allclose(x_hat, r_xhat, atol=2e-4, rtol=2e-4)
    assert jnp.allclose(mu, r_mu, atol=2e-4, rtol=2e-4)
    assert jnp.allclose(log_var, r_lv, atol=2e-4, rtol=2e-4)

    print("KERNEL_OK")
</pallas_src>

<mosaic_0001>
module attributes {stable_mosaic.version = 11 : i64} {
  func.func @nbvae_kernel(%arg0: i32, %arg1: memref<256x64xf32, #tpu.memory_space<vmem>>, %arg2: memref<256x8xf32, #tpu.memory_space<vmem>>, %arg3: memref<64x128xbf16, #tpu.memory_space<vmem>>, %arg4: memref<1x128xf32, #tpu.memory_space<vmem>>, %arg5: memref<128x128xbf16, #tpu.memory_space<vmem>>, %arg6: memref<1x128xf32, #tpu.memory_space<vmem>>, %arg7: memref<8x128xbf16, #tpu.memory_space<vmem>>, %arg8: memref<1x128xf32, #tpu.memory_space<vmem>>, %arg9: memref<128x128xbf16, #tpu.memory_space<vmem>>, %arg10: memref<1x128xf32, #tpu.memory_space<vmem>>, %arg11: memref<256x128xf32, #tpu.memory_space<vmem>>) attributes {dimension_semantics = [#tpu.dimension_semantics<parallel>], iteration_bounds = array<i64: 1>, scalar_prefetch = 0 : i64, scratch_operands = 0 : i64, tpu.core_type = #tpu.core_type<tc>, window_params = [{transform_indices = @transform_0, window_bounds = array<i64: 256, 64>}, {transform_indices = @transform_1, window_bounds = array<i64: 256, 8>}, {pipeline_mode = #tpu.pipeline_mode<synchronous>, transform_indices = @transform_2, window_bounds = array<i64: 64, 128>}, {pipeline_mode = #tpu.pipeline_mode<synchronous>, transform_indices = @transform_3, window_bounds = array<i64: 1, 128>}, {pipeline_mode = #tpu.pipeline_mode<synchronous>, transform_indices = @transform_4, window_bounds = array<i64: 128, 128>}, {pipeline_mode = #tpu.pipeline_mode<synchronous>, transform_indices = @transform_5, window_bounds = array<i64: 1, 128>}, {pipeline_mode = #tpu.pipeline_mode<synchronous>, transform_indices = @transform_6, window_bounds = array<i64: 8, 128>}, {pipeline_mode = #tpu.pipeline_mode<synchronous>, transform_indices = @transform_7, window_bounds = array<i64: 1, 128>}, {pipeline_mode = #tpu.pipeline_mode<synchronous>, transform_indices = @transform_8, window_bounds = array<i64: 128, 128>}, {pipeline_mode = #tpu.pipeline_mode<synchronous>, transform_indices = @transform_9, window_bounds = array<i64: 1, 128>}, {transform_indices = @transform_10, window_bounds = array<i64: 256, 128>}]} {
    %c0 = arith.constant 0 : index
    %c0_0 = arith.constant 0 : index
    %0 = vector.load %arg1[%c0, %c0_0] : memref<256x64xf32, #tpu.memory_space<vmem>>, vector<256x64xf32>
    %1 = arith.truncf %0 : vector<256x64xf32> to vector<256x64xbf16>
    %c0_1 = arith.constant 0 : index
    %c0_2 = arith.constant 0 : index
    %2 = vector.load %arg3[%c0_1, %c0_2] : memref<64x128xbf16, #tpu.memory_space<vmem>>, vector<64x128xbf16>
    %cst = arith.constant dense<0.000000e+00> : vector<256x128xf32>
    %3 = tpu.matmul %1, %2, %cst {dimension_numbers = #tpu.dot_dimension_numbers<[1], [0], [0], [1], [0, 0, 1, 1], [], []>} : vector<256x64xbf16>, vector<64x128xbf16>, vector<256x128xf32> -> vector<256x128xf32>
    %c0_3 = arith.constant 0 : index
    %c0_4 = arith.constant 0 : index
    %4 = vector.load %arg4[%c0_3, %c0_4] : memref<1x128xf32, #tpu.memory_space<vmem>>, vector<1x128xf32>
    %5 = vector.broadcast %4 : vector<1x128xf32> to vector<256x128xf32>
    %6 = arith.addf %3, %5 : vector<256x128xf32>
    %cst_5 = arith.constant 0.000000e+00 : f32
    %7 = vector.broadcast %cst_5 : f32 to vector<256x128xf32>
    %8 = arith.maximumf %6, %7 : vector<256x128xf32>
    %9 = arith.truncf %8 : vector<256x128xf32> to vector<256x128xbf16>
    %c0_6 = arith.constant 0 : index
    %c0_7 = arith.constant 0 : index
    %10 = vector.load %arg5[%c0_6, %c0_7] : memref<128x128xbf16, #tpu.memory_space<vmem>>, vector<128x128xbf16>
    %cst_8 = arith.constant dense<0.000000e+00> : vector<256x128xf32>
    %11 = tpu.matmul %9, %10, %cst_8 {dimension_numbers = #tpu.dot_dimension_numbers<[1], [0], [0], [1], [0, 0, 1, 1], [], []>} : vector<256x128xbf16>, vector<128x128xbf16>, vector<256x128xf32> -> vector<256x128xf32>
    %c0_9 = arith.constant 0 : index
    %c0_10 = arith.constant 0 : index
    %12 = vector.load %arg6[%c0_9, %c0_10] : memref<1x128xf32, #tpu.memory_space<vmem>>, vector<1x128xf32>
    %13 = vector.broadcast %12 : vector<1x128xf32> to vector<256x128xf32>
    %14 = arith.addf %11, %13 : vector<256x128xf32>
    %15 = vector.extract_strided_slice %14 {offsets = [0, 64], sizes = [256, 8], strides = [1, 1]} : vector<256x128xf32> to vector<256x8xf32>
    %16 = vector.extract_strided_slice %14 {offsets = [0, 72], sizes = [256, 8], strides = [1, 1]} : vector<256x128xf32> to vector<256x8xf32>
    %c0_11 = arith.constant 0 : index
    %c0_12 = arith.constant 0 : index
    %17 = vector.load %arg2[%c0_11, %c0_12] : memref<256x8xf32, #tpu.memory_space<vmem>>, vector<256x8xf32>
    %cst_13 = arith.constant 5.000000e-01 : f32
    %18 = vector.broadcast %cst_13 : f32 to vector<256x8xf32>
    %19 = arith.mulf %18, %16 : vector<256x8xf32>
    %20 = math.exp %19 : vector<256x8xf32>
    %21 = arith.mulf %17, %20 : vector<256x8xf32>
    %22 = arith.addf %15, %21 : vector<256x8xf32>
    %23 = arith.truncf %22 : vector<256x8xf32> to vector<256x8xbf16>
    %c0_14 = arith.constant 0 : index
    %c0_15 = arith.constant 0 : index
    %24 = vector.load %arg7[%c0_14, %c0_15] : memref<8x128xbf16, #tpu.memory_space<vmem>>, vector<8x128xbf16>
    %cst_16 = arith.constant dense<0.000000e+00> : vector<256x128xf32>
    %25 = tpu.matmul %23, %24, %cst_16 {dimension_numbers = #tpu.dot_dimension_numbers<[1], [0], [0], [1], [0, 0, 1, 1], [], []>} : vector<256x8xbf16>, vector<8x128xbf16>, vector<256x128xf32> -> vector<256x128xf32>
    %c0_17 = arith.constant 0 : index
    %c0_18 = arith.constant 0 : index
    %26 = vector.load %arg8[%c0_17, %c0_18] : memref<1x128xf32, #tpu.memory_space<vmem>>, vector<1x128xf32>
    %27 = vector.broadcast %26 : vector<1x128xf32> to vector<256x128xf32>
    %28 = arith.addf %25, %27 : vector<256x128xf32>
    %cst_19 = arith.constant 0.000000e+00 : f32
    %29 = vector.broadcast %cst_19 : f32 to vector<256x128xf32>
    %30 = arith.maximumf %28, %29 : vector<256x128xf32>
    %31 = arith.truncf %30 : vector<256x128xf32> to vector<256x128xbf16>
    %c0_20 = arith.constant 0 : index
    %c0_21 = arith.constant 0 : index
    %32 = vector.load %arg9[%c0_20, %c0_21] : memref<128x128xbf16, #tpu.memory_space<vmem>>, vector<128x128xbf16>
    %cst_22 = arith.constant dense<0.000000e+00> : vector<256x128xf32>
    %33 = tpu.matmul %31, %32, %cst_22 {dimension_numbers = #tpu.dot_dimension_numbers<[1], [0], [0], [1], [0, 0, 1, 1], [], []>} : vector<256x128xbf16>, vector<128x128xbf16>, vector<256x128xf32> -> vector<256x128xf32>
    %c0_23 = arith.constant 0 : index
    %c0_24 = arith.constant 0 : index
    %34 = vector.load %arg10[%c0_23, %c0_24] : memref<1x128xf32, #tpu.memory_space<vmem>>, vector<1x128xf32>
    %35 = vector.broadcast %34 : vector<1x128xf32> to vector<256x128xf32>
    %36 = arith.addf %33, %35 : vector<256x128xf32>
    %37 = arith.negf %36 : vector<256x128xf32>
    %38 = math.exp %37 : vector<256x128xf32>
    %cst_25 = arith.constant 1.000000e+00 : f32
    %39 = vector.broadcast %cst_25 : f32 to vector<256x128xf32>
    %40 = arith.addf %39, %38 : vector<256x128xf32>
    %41 = arith.divf %39, %40 : vector<256x128xf32>
    %42 = tpu.iota {dimensions = array<i32: 1>} : vector<256x128xi32>
    %c64_i32 = arith.constant 64 : i32
    %43 = vector.broadcast %c64_i32 : i32 to vector<256x128xi32>
    %44 = arith.cmpi sge, %42, %43 : vector<256x128xi32>
    %c80_i32 = arith.constant 80 : i32
    %45 = vector.broadcast %c80_i32 : i32 to vector<256x128xi32>
    %46 = arith.cmpi slt, %42, %45 : vector<256x128xi32>
    %47 = arith.andi %44, %46 : vector<256x128xi1>
    %48 = arith.select %47, %14, %41 : vector<256x128xi1>, vector<256x128xf32>
    %c0_26 = arith.constant 0 : index
    %c0_27 = arith.constant 0 : index
    %49 = vector.load %arg11[%c0_26, %c0_27] : memref<256x128xf32, #tpu.memory_space<vmem>>, vector<256x128xf32>
    tpu.vector_store %arg11[%c0_26, %c0_27], %48 {strides = array<i32>} : memref<256x128xf32, #tpu.memory_space<vmem>>, vector<256x128xf32>,
    return
  }
  func.func @transform_0(%arg0: i32) -> (i32, i32) {
    %c0_i32 = arith.constant 0 : i32
    %c0_i32_0 = arith.constant 0 : i32
    return %arg0, %c0_i32 : i32, i32
  }
  func.func @transform_1(%arg0: i32) -> (i32, i32) {
    %c0_i32 = arith.constant 0 : i32
    %c0_i32_0 = arith.constant 0 : i32
    return %arg0, %c0_i32 : i32, i32
  }
  func.func @transform_2(%arg0: i32) -> (i32, i32) {
    %c0_i32 = arith.constant 0 : i32
    %c0_i32_0 = arith.constant 0 : i32
    %c0_i32_1 = arith.constant 0 : i32
    return %c0_i32, %c0_i32_0 : i32, i32
  }
  func.func @transform_3(%arg0: i32) -> (i32, i32) {
    %c0_i32 = arith.constant 0 : i32
    %c0_i32_0 = arith.constant 0 : i32
    %c0_i32_1 = arith.constant 0 : i32
    return %c0_i32, %c0_i32_0 : i32, i32
  }
  func.func @transform_4(%arg0: i32) -> (i32, i32) {
    %c0_i32 = arith.constant 0 : i32
    %c0_i32_0 = arith.constant 0 : i32
    %c0_i32_1 = arith.constant 0 : i32
    return %c0_i32, %c0_i32_0 : i32, i32
  }
  func.func @transform_5(%arg0: i32) -> (i32, i32) {
    %c0_i32 = arith.constant 0 : i32
    %c0_i32_0 = arith.constant 0 : i32
    %c0_i32_1 = arith.constant 0 : i32
    return %c0_i32, %c0_i32_0 : i32, i32
  }
  func.func @transform_6(%arg0: i32) -> (i32, i32) {
    %c0_i32 = arith.constant 0 : i32
    %c0_i32_0 = arith.constant 0 : i32
    %c0_i32_1 = arith.constant 0 : i32
    return %c0_i32, %c0_i32_0 : i32, i32
  }
  func.func @transform_7(%arg0: i32) -> (i32, i32) {
    %c0_i32 = arith.constant 0 : i32
    %c0_i32_0 = arith.constant 0 : i32
    %c0_i32_1 = arith.constant 0 : i32
    return %c0_i32, %c0_i32_0 : i32, i32
  }
  func.func @transform_8(%arg0: i32) -> (i32, i32) {
    %c0_i32 = arith.constant 0 : i32
    %c0_i32_0 = arith.constant 0 : i32
    %c0_i32_1 = arith.constant 0 : i32
    return %c0_i32, %c0_i32_0 : i32, i32
  }
  func.func @transform_9(%arg0: i32) -> (i32, i32) {
    %c0_i32 = arith.constant 0 : i32
    %c0_i32_0 = arith.constant 0 : i32
    %c0_i32_1 = arith.constant 0 : i32
    return %c0_i32, %c0_i32_0 : i32, i32
  }
  func.func @transform_10(%arg0: i32) -> (i32, i32) {
    %c0_i32 = arith.constant 0 : i32
    %c0_i32_0 = arith.constant 0 : i32
    return %arg0, %c0_i32 : i32, i32
  }
}

</mosaic_0001>

<bundles_post_ra>
// kernel: tpu_custom_call.1
= control target key start
LH: loop header
LB: loop body
LE: loop exit
PB: predicated region body
PF: predicated region fallthrough
CT: control target
= control target key end

     0   :  { %s3237_s0 = inlined_call_operand.vmem [shape: f32[256,64], index: 0, kind: input, shape index: {}]   ;;  %s3238_s1 = inlined_call_operand.vmem [shape: f32[256,8], index: 1, kind: input, shape index: {}]   ;;  %s3239_s2 = inlined_call_operand.vmem [shape: bf16[64,128], index: 2, kind: input, shape index: {}]   ;;  %s3240_s3 = inlined_call_operand.vmem [shape: f32[1,128], index: 3, kind: input, shape index: {}]   ;;  %s3241_s4 = inlined_call_operand.vmem [shape: bf16[128,128], index: 4, kind: input, shape index: {}]   ;;  %s3242_s5 = inlined_call_operand.vmem [shape: f32[1,128], index: 5, kind: input, shape index: {}]   ;;  %s3243_s6 = inlined_call_operand.vmem [shape: bf16[8,128], index: 6, kind: input, shape index: {}]   ;;  %s3244_s7 = inlined_call_operand.vmem [shape: f32[1,128], index: 7, kind: input, shape index: {}]   ;;  %s3245_s8 = inlined_call_operand.vmem [shape: bf16[128,128], index: 8, kind: input, shape index: {}]   ;;  %s3246_s9 = inlined_call_operand.vmem [shape: f32[1,128], index: 9, kind: input, shape index: {}]   ;;  %s3247_s10 = inlined_call_operand.hbm [shape: f32[256,128], index: 10, kind: output, shape index: {}]  }
   0x1   :  { %v2170_v0 = vld [vmem:[%s3239_s2 + $0x18] sm:$0xff]  ;;  %v2169_v1 = vld [vmem:[%s3239_s2 + $0x10] sm:$0xff] }
   0x2   :  { %174 = vmatpush.bf16.msra.mxu0 %v2170_v0 }
   0x3   :  { %15 = vsyncpa [#allocation3], 0  ;;  %v2168_v2 = vld [vmem:[%s3239_s2 + $0x8] sm:$0xff]  ;;  %v2167_v3 = vld [vmem:[%s3239_s2] sm:$0xff]  ;;  %vm121_vm0 = vcmask 523264   ;;  %s2417_s12 = smov 56  }
   0x4   :  { %v37_v4 = vld [vmem:[%s3237_s0] sm:$0xff]  ;;  %v38_v5 = vld [vmem:[%s3237_s0 + $0x8] sm:$0xff]  ;;  %v39_v7 = vld [vmem:[%s3237_s0 + $0x10] sm:$0xff]  ;;  %s2418_s25 = smov 64   ;;  %vm1030_vm1 = vcmask 1043456   ;;  %vm981_vm2 = vcmask 64512  }
   0x5   :  { %v69_v6 = vpack.c.bf16 %v38_v5, %v37_v4  ;;  %v40_v8 = vld [vmem:[%s3237_s0 + $0x18] sm:$0xff]  ;;  %v2177_v11 = vld [vmem:[%s3241_s4 + $0x30] sm:$0xff]  ;;  %v2176_v12 = vld [vmem:[%s3241_s4 + $0x28] sm:$0xff]  ;;  %s2011_s18 = sshll.u32 %s3247_s10, 4  ;;  %s2421_s19 = smov 8   ;;  %s2012_s18 = int_to_ptr.hbm [resolvable:$true] %s2011_s18 }
   0x6   :  { %175 = vmatpush.bf16.msra.mxu0 %v2169_v1  ;;  %v70_v9 = vpack.c.bf16 %v40_v8, %v39_v7  ;;  %v2178_v10 = vld [vmem:[%s3241_s4 + $0x38] sm:$0xff]  ;;  %v41_v13 = vld [vmem:[%s3237_s0 + $0x20] sm:$0xff]  ;;  %v42_v14 = vld [vmem:[%s3237_s0 + $0x28] sm:$0xff] }
   0x7   :  { %375 = vmatpush.bf16.msra.mxu1 %v2178_v10  ;;  %v2175_v15 = vld [vmem:[%s3241_s4 + $0x20] sm:$0xff]  ;;  %v71_v16 = vpack.c.bf16 %v42_v14, %v41_v13  ;;  %v43_v17 = vld [vmem:[%s3237_s0 + $0x30] sm:$0xff]  ;;  %v44_v18 = vld [vmem:[%s3237_s0 + $0x38] sm:$0xff] }
   0x8   :  { %v72_v19 = vpack.c.bf16 %v44_v18, %v43_v17  ;;  %v2174_v20 = vld [vmem:[%s3241_s4 + $0x18] sm:$0xff]  ;;  %v45_v21 = vld [vmem:[%s3237_s0 + $0x40] sm:$0xff]  ;;  %v46_v22 = vld [vmem:[%s3237_s0 + $0x48] sm:$0xff] }
   0x9   :  { %v73_v23 = vpack.c.bf16 %v46_v22, %v45_v21  ;;  %v2173_v24 = vld [vmem:[%s3241_s4 + $0x10] sm:$0xff]  ;;  %v2172_v25 = vld [vmem:[%s3241_s4 + $0x8] sm:$0xff]  ;;  %v2171_v26 = vld [vmem:[%s3241_s4] sm:$0xff] }
   0xa   :  { %176 = vmatpush.bf16.msra.mxu0 %v2168_v2  ;;  %v47_v27 = vld [vmem:[%s3237_s0 + $0x50] sm:$0xff]  ;;  %v48_v28 = vld [vmem:[%s3237_s0 + $0x58] sm:$0xff]  ;;  %v49_v30 = vld [vmem:[%s3237_s0 + $0x60] sm:$0xff] }
   0xb   :  { %376 = vmatpush.bf16.msra.mxu1 %v2177_v11  ;;  %v74_v29 = vpack.c.bf16 %v48_v28, %v47_v27  ;;  %v50_v31 = vld [vmem:[%s3237_s0 + $0x68] sm:$0xff]  ;;  %v2565_v34 = vld [vmem:[%s3240_s3] ss:$0 sm:$0xff]  ;;  %v51_v62 = vld [vmem:[%s3237_s0 + $0x70] sm:$0xff] }
   0xc   :  { %v75_v33 = vpack.c.bf16 %v50_v31, %v49_v30  ;;  %v52_v63 = vld [vmem:[%s3237_s0 + $0x78] sm:$0xff]  ;;  %v53_v8 = vld [vmem:[%s3237_s0 + $0x80] sm:$0xff] }
   0xd   :  { %v76_v0 = vpack.c.bf16 %v52_v63, %v51_v62 }
   0xe   :  { %177 = vmatpush.bf16.msra.mxu0 %v2167_v3 }
   0xf   :  { %377 = vmatpush.bf16.msra.mxu1 %v2176_v12 }
  0x11   :  { %2039 = vmatmul.msk.bf16.vlgmr.msra.gmra.mxu0 %vm121_vm0, %v69_v6 }
  0x13   :  { %378 = vmatpush.bf16.msra.mxu1 %v2175_v15 }
  0x17   :  { %379 = vmatpush.bf16.msra.mxu1 %v2174_v20 }
  0x1b   :  { %380 = vmatpush.bf16.msra.mxu1 %v2173_v24 }
  0x1f   :  { %381 = vmatpush.bf16.msra.mxu1 %v2172_v25 }
  0x21   :  { %2040 = vmatmul.msk.bf16.gmra.mxu0 %vm121_vm0, %v70_v9  ;;  %v54_v9 = vld [vmem:[%s3237_s0 + $0x88] sm:$0xff] }
  0x22   :  { %v77_v10 = vpack.c.bf16 %v54_v9, %v53_v8 }
  0x23   :  { %382 = vmatpush.bf16.msra.mxu1 %v2171_v26 }
  0x31   :  { %2041 = vmatmul.msk.bf16.gmra.mxu0 %vm121_vm0, %v71_v16 }
  0x41   :  { %2042 = vmatmul.msk.bf16.gmra.mxu0 %vm121_vm0, %v72_v19 }
  0x51   :  { %2043 = vmatmul.msk.bf16.gmra.mxu0 %vm121_vm0, %v73_v23  ;;  %v2598_v23 = vld [vmem:[%s3242_s5] ss:$0 sm:$0xff] }
  0x61   :  { %2044 = vmatmul.msk.bf16.gmra.mxu0 %vm121_vm0, %v74_v29 }
  0x71   :  { %2045 = vmatmul.msk.bf16.gmra.mxu0 %vm121_vm0, %v75_v33 }
  0x81   :  { %2046 = vmatmul.msk.bf16.gmra.mxu0 %vm121_vm0, %v76_v0 }
  0x8e   :  { %v179_v32 = vpop.f32.mrf.mxu0 }
  0x8f   :  { %v180_v35 = vadd.f32 %v2565_v34, %v179_v32 }
  0x91   :  { %v259_v38 = vmax.f32 %v180_v35, 0.0  ;;  %2047 = vmatmul.msk.bf16.gmra.mxu0 %vm121_vm0, %v77_v10 }
  0x96   :  { %v181_v36 = vpop.f32.mrf.mxu0 }
  0x97   :  { %v182_v37 = vadd.f32 %v2565_v34, %v181_v36 }
  0x99   :  { %v260_v39 = vmax.f32 %v182_v37, 0.0 }
  0x9b   :  { %v291_v40 = vpack.c.bf16 %v260_v39, %v259_v38 }
  0x9d   :  { %383 = vmatmul.bf16.vlgmr.msra.gmra.mxu1 %v291_v40 }
  0x9e   :  { %v184_v41 = vpop.f32.mrf.mxu0 }
  0x9f   :  { %v185_v42 = vadd.f32 %v2565_v34, %v184_v41  ;;  %v55_v41 = vld [vmem:[%s3237_s0 + $0x90] sm:$0xff] }
  0xa1   :  { %v261_v44 = vmax.f32 %v185_v42, 0.0  ;;  %v56_v42 = vld [vmem:[%s3237_s0 + $0x98] sm:$0xff] }
  0xa6   :  { %v186_v43 = vpop.f32.mrf.mxu0 }
  0xa7   :  { %v187_v45 = vadd.f32 %v2565_v34, %v186_v43 }
  0xa9   :  { %v262_v46 = vmax.f32 %v187_v45, 0.0 }
  0xab   :  { %v292_v47 = vpack.c.bf16 %v262_v46, %v261_v44  ;;  %v78_v44 = vpack.c.bf16 %v56_v42, %v55_v41 }
  0xad   :  { %388 = vmatmul.bf16.gmra.mxu1 %v292_v47  ;;  %2048 = vmatmul.msk.bf16.gmra.mxu0 %vm121_vm0, %v78_v44 }
  0xae   :  { %v189_v48 = vpop.f32.mrf.mxu0 }
  0xaf   :  { %v190_v49 = vadd.f32 %v2565_v34, %v189_v48 }
  0xb1   :  { %v263_v51 = vmax.f32 %v190_v49, 0.0 }
  0xb6   :  { %v191_v50 = vpop.f32.mrf.mxu0 }
  0xb7   :  { %v192_v52 = vadd.f32 %v2565_v34, %v191_v50 }
  0xb9   :  { %v264_v53 = vmax.f32 %v192_v52, 0.0  ;;  %v57_v52 = vld [vmem:[%s3237_s0 + $0xa0] sm:$0xff] }
  0xbb   :  { %v293_v54 = vpack.c.bf16 %v264_v53, %v263_v51  ;;  %v58_v53 = vld [vmem:[%s3237_s0 + $0xa8] sm:$0xff] }
  0xbd   :  { %393 = vmatmul.bf16.gmra.mxu1 %v293_v54 }
  0xbe   :  { %v194_v55 = vpop.f32.mrf.mxu0 }
  0xbf   :  { %v195_v56 = vadd.f32 %v2565_v34, %v194_v55 }
  0xc1   :  { %v265_v58 = vmax.f32 %v195_v56, 0.0  ;;  %v79_v56 = vpack.c.bf16 %v58_v53, %v57_v52 }
  0xc3   :  { %2049 = vmatmul.msk.bf16.gmra.mxu0 %vm121_vm0, %v79_v56 }
  0xc6   :  { %v196_v57 = vpop.f32.mrf.mxu0 }
  0xc7   :  { %v197_v59 = vadd.f32 %v2565_v34, %v196_v57 }
  0xc9   :  { %v266_v60 = vmax.f32 %v197_v59, 0.0 }
  0xcb   :  { %v294_v61 = vpack.c.bf16 %v266_v60, %v265_v58 }
  0xcd   :  { %398 = vmatmul.bf16.gmra.mxu1 %v294_v61 }
  0xce   :  { %v199_v1 = vpop.f32.mrf.mxu0 }
  0xcf   :  { %v200_v2 = vadd.f32 %v2565_v34, %v199_v1 }
  0xd1   :  { %v267_v4 = vmax.f32 %v200_v2, 0.0 }
  0xd6   :  { %v201_v3 = vpop.f32.mrf.mxu0 }
  0xd7   :  { %v202_v5 = vadd.f32 %v2565_v34, %v201_v3 }
  0xd9   :  { %v268_v6 = vmax.f32 %v202_v5, 0.0 }
  0xdb   :  { %v295_v7 = vpack.c.bf16 %v268_v6, %v267_v4 }
  0xdd   :  { %403 = vmatmul.bf16.gmra.mxu1 %v295_v7 }
  0xde   :  { %v204_v11 = vpop.f32.mrf.mxu0 }
  0xdf   :  { %v205_v12 = vadd.f32 %v2565_v34, %v204_v11 }
  0xe1   :  { %v269_v14 = vmax.f32 %v205_v12, 0.0 }
  0xe6   :  { %v206_v13 = vpop.f32.mrf.mxu0 }
  0xe7   :  { %v207_v15 = vadd.f32 %v2565_v34, %v206_v13 }
  0xe9   :  { %v270_v16 = vmax.f32 %v207_v15, 0.0  ;;  %v60_v15 = vld [vmem:[%s3237_s0 + $0xb8] sm:$0xff] }
  0xeb   :  { %v296_v17 = vpack.c.bf16 %v270_v16, %v269_v14  ;;  %v59_v14 = vld [vmem:[%s3237_s0 + $0xb0] sm:$0xff] }
  0xed   :  { %408 = vmatmul.bf16.gmra.mxu1 %v296_v17  ;;  %v80_v17 = vpack.c.bf16 %v60_v15, %v59_v14 }
  0xee   :  { %v209_v18 = vpop.f32.mrf.mxu0 }
  0xef   :  { %v210_v19 = vadd.f32 %v2565_v34, %v209_v18  ;;  %2050 = vmatmul.msk.bf16.gmra.mxu0 %vm121_vm0, %v80_v17 }
  0xf1   :  { %v271_v21 = vmax.f32 %v210_v19, 0.0 }
  0xf6   :  { %v211_v20 = vpop.f32.mrf.mxu0 }
  0xf7   :  { %v212_v22 = vadd.f32 %v2565_v34, %v211_v20 }
  0xf9   :  { %v272_v24 = vmax.f32 %v212_v22, 0.0 }
  0xfb   :  { %v297_v26 = vpack.c.bf16 %v272_v24, %v271_v21 }
  0xfd   :  { %413 = vmatmul.bf16.gmra.mxu1 %v297_v26 }
  0xfe   :  { %v214_v3 = vpop.f32.mrf.mxu0 }
  0xff   :  { %v215_v5 = vadd.f32 %v2565_v34, %v214_v3 }
 0x101   :  { %v273_v8 = vmax.f32 %v215_v5, 0.0 }
 0x106   :  { %v216_v6 = vpop.f32.mrf.mxu0 }
 0x107   :  { %v217_v7 = vadd.f32 %v2565_v34, %v216_v6 }
 0x109   :  { %v274_v9 = vmax.f32 %v217_v7, 0.0 }
 0x10b   :  { %v298_v10 = vpack.c.bf16 %v274_v9, %v273_v8  ;;  %v468_v9 = vld [vmem:[%s3238_s1 + $0x20] sm:$0xff] }
 0x10d   :  { %418 = vmatmul.bf16.gmra.mxu1 %v298_v10 }
 0x10e   :  { %v219_v12 = vpop.f32.mrf.mxu0 }
 0x10f   :  { %v220_v13 = vadd.f32 %v2565_v34, %v219_v12 }
 0x111   :  { %v275_v18 = vmax.f32 %v220_v13, 0.0 }
 0x116   :  { %v221_v16 = vpop.f32.mrf.mxu0 }
 0x117   :  { %v222_v19 = vadd.f32 %v2565_v34, %v221_v16 }
 0x119   :  { %v276_v21 = vmax.f32 %v222_v19, 0.0  ;;  %v64_v19 = vld [vmem:[%s3237_s0 + $0xd8] sm:$0xff] }
 0x11a   :  { %v384_v25 = vpop.f32.mrf.mxu1 }
 0x11b   :  { %v2601_v27 = vadd.f32 %v2598_v23, %v384_v25  ;;  %v299_v22 = vpack.c.bf16 %v276_v21, %v275_v18  ;;  %v63_v18 = vld [vmem:[%s3237_s0 + $0xd0] sm:$0xff] }
 0x11d   :  { %v496_v28 = vmul.f32 0.5, %v2601_v27  ;;  %423 = vmatmul.bf16.gmra.mxu1 %v299_v22 }
 0x11f   :  { %v528_v29 = vmul.f32 1.442695, %v496_v28 }
 0x121   :  { %2196 = vpow2.f32 %v528_v29 }
 0x122   :  { %v386_v30 = vpop.f32.mrf.mxu1 }
 0x123   :  { %v2605_v31 = vadd.f32 %v2598_v23, %v386_v30  ;;  %v464_v30 = vld [vmem:[%s3238_s1] sm:$0xff] }
 0x125   :  { %v497_v32 = vmul.f32 0.5, %v2605_v31 }
 0x127   :  { %v2197_v33 = vpop.eup %2196  ;;  %v530_v35 = vmul.f32 1.442695, %v497_v32 }
 0x128   :  { %624 = vrot.lane.b32.xlu0 %v2197_v33, %s2417_s12 }
 0x129   :  { %2198 = vpow2.f32 %v530_v35 }
 0x12a   :  { %v389_v36 = vpop.f32.mrf.mxu1 }
 0x12b   :  { %v2610_v37 = vadd.f32 %v2598_v23, %v389_v36 }
 0x12d   :  { %v498_v38 = vmul.f32 0.5, %v2610_v37 }
 0x12f   :  { %v2199_v39 = vpop.eup %2198  ;;  %v532_v40 = vmul.f32 1.442695, %v498_v38 }
 0x130   :  { %626 = vrot.lane.b32.xlu0 %v2199_v39, %s2417_s12  ;;  %v465_v39 = vld [vmem:[%s3238_s1 + $0x8] sm:$0xff] }
 0x131   :  { %2200 = vpow2.f32 %v532_v40 }
 0x132   :  { %v391_v43 = vpop.f32.mrf.mxu1 }
 0x133   :  { %v2621_v45 = vadd.f32 %v2598_v23, %v391_v43 }
 0x135   :  { %v499_v46 = vmul.f32 0.5, %v2621_v45 }
 0x137   :  { %v2201_v47 = vpop.eup %2200  ;;  %v534_v48 = vmul.f32 1.442695, %v499_v46 }
 0x138   :  { %628 = vrot.lane.b32.xlu1 %v2201_v47, %s2417_s12 }
 0x139   :  { %2202 = vpow2.f32 %v534_v48  ;;  %v466_v48 = vld [vmem:[%s3238_s1 + $0x10] sm:$0xff] }
 0x13a   :  { %v394_v49 = vpop.f32.mrf.mxu1 }
 0x13b   :  { %v2627_v50 = vadd.f32 %v2598_v23, %v394_v49 }
 0x13d   :  { %v500_v51 = vmul.f32 0.5, %v2627_v50 }
 0x13f   :  { %v2203_v54 = vpop.eup %2202  ;;  %v536_v55 = vmul.f32 1.442695, %v500_v51 }
 0x140   :  { %630 = vrot.lane.b32.xlu1 %v2203_v54, %s2417_s12 }
 0x141   :  { %2204 = vpow2.f32 %v536_v55 }
 0x142   :  { %v396_v57 = vpop.f32.mrf.mxu1 }
 0x143   :  { %v2638_v58 = vadd.f32 %v2598_v23, %v396_v57  ;;  %v469_v57 = vld [vmem:[%s3238_s1 + $0x28] sm:$0xff] }
 0x145   :  { %v501_v59 = vmul.f32 0.5, %v2638_v58 }
 0x147   :  { %v2205_v60 = vpop.eup %2204  ;;  %v538_v61 = vmul.f32 1.442695, %v501_v59 }
 0x148   :  { %632 = vrot.lane.b32.xlu2 %v2205_v60, %s2417_s12  ;;  %v61_v60 = vld [vmem:[%s3237_s0 + $0xc0] sm:$0xff] }
 0x149   :  { %2206 = vpow2.f32 %v538_v61  ;;  %v62_v61 = vld [vmem:[%s3237_s0 + $0xc8] sm:$0xff] }
 0x14a   :  { %v399_v62 = vpop.f32.mrf.mxu1 }
 0x14b   :  { %v2644_v63 = vadd.f32 %v2598_v23, %v399_v62  ;;  %v81_v62 = vpack.c.bf16 %v62_v61, %v61_v60 }
 0x14d   :  { %v502_v0 = vmul.f32 0.5, %v2644_v63  ;;  %2051 = vmatmul.msk.bf16.gmra.mxu0 %vm121_vm0, %v81_v62 }
 0x14f   :  { %v2207_v1 = vpop.eup %2206  ;;  %v540_v2 = vmul.f32 1.442695, %v502_v0 }
 0x150   :  { %634 = vrot.lane.b32.xlu2 %v2207_v1, %s2417_s12  ;;  %v467_v1 = vld [vmem:[%s3238_s1 + $0x18] sm:$0xff] }
 0x151   :  { %2208 = vpow2.f32 %v540_v2 }
 0x152   :  { %v401_v11 = vpop.f32.mrf.mxu1 }
 0x153   :  { %v2661_v25 = vadd.f32 %v2598_v23, %v401_v11 }
 0x155   :  { %v503_v26 = vmul.f32 0.5, %v2661_v25 }
 0x157   :  { %v2209_v4 = vpop.eup %2208  ;;  %v542_v28 = vmul.f32 1.442695, %v503_v26 }
 0x158   :  { %636 = vrot.lane.b32.xlu2 %v2209_v4, %s2417_s12  ;;  %v224_v4 = vpop.f32.mrf.mxu0 }
 0x159   :  { %2210 = vpow2.f32 %v542_v28  ;;  %v225_v11 = vadd.f32 %v2565_v34, %v224_v4  ;;  %v470_v28 = vld [vmem:[%s3238_s1 + $0x30] sm:$0xff]  ;;  %v471_v4 = vld [vmem:[%s3238_s1 + $0x38] sm:$0xff] }
 0x15a   :  { %v404_v20 = vpop.f32.mrf.mxu1 }
 0x15b   :  { %v2665_v29 = vadd.f32 %v2598_v23, %v404_v20  ;;  %v277_v16 = vmax.f32 %v225_v11, 0.0 }
 0x15d   :  { %v504_v36 = vmul.f32 0.5, %v2665_v29 }
 0x15f   :  { %v544_v38 = vmul.f32 1.442695, %v504_v36  ;;  %v2211_v41 = vpop.eup %2210 }
 0x160   :  { %v226_v15 = vpop.f32.mrf.mxu0 }
 0x161   :  { %2212 = vpow2.f32 %v544_v38  ;;  %v227_v17 = vadd.f32 %v2565_v34, %v226_v15 }
 0x162   :  { %v406_v24 = vpop.f32.mrf.mxu1 }
 0x163   :  { %v2676_v40 = vadd.f32 %v2598_v23, %v406_v24  ;;  %v278_v21 = vmax.f32 %v227_v17, 0.0  ;;  %v82_v24 = vpack.c.bf16 %v64_v19, %v63_v18 }
 0x165   :  { %v505_v47 = vmul.f32 0.5, %v2676_v40  ;;  %v300_v26 = vpack.c.bf16 %v278_v21, %v277_v16  ;;  %2052 = vmatmul.msk.bf16.gmra.mxu0 %vm121_vm0, %v82_v24 }
 0x167   :  { %v546_v49 = vmul.f32 1.442695, %v505_v47  ;;  %v2213_v52 = vpop.eup %2212  ;;  %428 = vmatmul.bf16.gmra.mxu1 %v300_v26 }
 0x169   :  { %2214 = vpow2.f32 %v546_v49 }
 0x16a   :  { %v409_v32 = vpop.f32.mrf.mxu1 }
 0x16b   :  { %v2685_v51 = vadd.f32 %v2598_v23, %v409_v32 }
 0x16d   :  { %v506_v56 = vmul.f32 0.5, %v2685_v51 }
 0x16f   :  { %v548_v2 = vmul.f32 1.442695, %v506_v56  ;;  %v2215_v6 = vpop.eup %2214 }
 0x171   :  { %2216 = vpow2.f32 %v548_v2 }
 0x172   :  { %v411_v43 = vpop.f32.mrf.mxu1 }
 0x173   :  { %v2702_v0 = vadd.f32 %v2598_v23, %v411_v43  ;;  %v65_v43 = vld [vmem:[%s3237_s0 + $0xe0] sm:$0xff] }
 0x175   :  { %v507_v8 = vmul.f32 0.5, %v2702_v0 }
 0x177   :  { %v550_v12 = vmul.f32 1.442695, %v507_v8  ;;  %v2217_v20 = vpop.eup %2216 }
 0x179   :  { %2218 = vpow2.f32 %v550_v12 }
 0x17a   :  { %v2687_v55 = vpop.f32.mrf.mxu1 }
 0x17b   :  { %v2749_v2 = vadd.f32 %v2598_v23, %v2687_v55 }
 0x182   :  { %v416_v10 = vpop.f32.mrf.mxu1 }
 0x183   :  { %v2717_v14 = vadd.f32 %v2598_v23, %v416_v10 }
 0x185   :  { %v509_v22 = vmul.f32 0.5, %v2717_v14 }
 0x187   :  { %v554_v32 = vmul.f32 1.442695, %v509_v22 }
 0x189   :  { %2220 = vpow2.f32 %v554_v32  ;;  %v68_v32 = vld [vmem:[%s3237_s0 + $0xf8] sm:$0xff] }
 0x19a   :  { %v625_v33 = vpop.permute.xlu0 %624 }
 0x19b   :  { %v720_v35 = vmul.f32 %v625_v33, %v464_v30  ;;  %v229_v33 = vpop.f32.mrf.mxu0 }
 0x19c   :  { %v230_v38 = vadd.f32 %v2565_v34, %v229_v33  ;;  %v472_v33 = vld [vmem:[%s3238_s1 + $0x40] sm:$0xff] }
 0x19d   :  { %784 = vrot.lane.b32.xlu0 %v720_v35, %s2418_s25  ;;  %v2219_v35 = vpop.eup %2218 }
 0x1a2   :  { %v627_v42 = vpop.permute.xlu0 %626  ;;  %v633_v46 = vpop.permute.xlu2 %632 }
 0x1a3   :  { %v721_v44 = vmul.f32 %v627_v42, %v465_v39  ;;  %v724_v13 = vmul.f32 %v633_v46, %v468_v9  ;;  %v231_v39 = vpop.f32.mrf.mxu0  ;;  %v2221_v46 = vpop.eup %2220 }
 0x1a4   :  { %v232_v42 = vadd.f32 %v2565_v34, %v231_v39 }
 0x1a5   :  { %638 = vrot.lane.b32.xlu0 %v2211_v41, %s2417_s12  ;;  %786 = vrot.lane.b32.xlu1 %v721_v44, %s2418_s25  ;;  %v279_v41 = vmax.f32 %v230_v38, 0.0  ;;  %v66_v44 = vld [vmem:[%s3237_s0 + $0xe8] sm:$0xff] }
 0x1a6   :  { %v280_v47 = vmax.f32 %v232_v42, 0.0  ;;  %v473_v38 = vld [vmem:[%s3238_s1 + $0x48] sm:$0xff] }
 0x1a8   :  { %v301_v49 = vpack.c.bf16 %v280_v47, %v279_v41 }
 0x1aa   :  { %v629_v53 = vpop.permute.xlu1 %628  ;;  %v635_v59 = vpop.permute.xlu2 %634  ;;  %433 = vmatmul.bf16.gmra.mxu1 %v301_v49 }
 0x1ab   :  { %v722_v54 = vmul.f32 %v629_v53, %v466_v48  ;;  %v725_v3 = vmul.f32 %v635_v59, %v469_v57  ;;  %v83_v48 = vpack.c.bf16 %v66_v44, %v65_v43  ;;  %v419_v53 = vpop.f32.mrf.mxu1 }
 0x1ad   :  { %640 = vrot.lane.b32.xlu0 %v2213_v52, %s2417_s12  ;;  %788 = vrot.lane.b32.xlu1 %v722_v54, %s2418_s25  ;;  %v234_v52 = vpop.f32.mrf.mxu0 }
 0x1ae   :  { %2053 = vmatmul.msk.bf16.gmra.mxu0 %vm121_vm0, %v83_v48  ;;  %v235_v54 = vadd.f32 %v2565_v34, %v234_v52 }
 0x1b0   :  { %v281_v57 = vmax.f32 %v235_v54, 0.0 }
 0x1b2   :  { %v631_v5 = vpop.permute.xlu1 %630  ;;  %v637_v30 = vpop.permute.xlu2 %636 }
 0x1b3   :  { %v723_v7 = vmul.f32 %v631_v5, %v467_v1  ;;  %v726_v36 = vmul.f32 %v637_v30, %v470_v28  ;;  %v421_v1 = vpop.f32.mrf.mxu1  ;;  %v2756_v5 = vadd.f32 %v2598_v23, %v419_v53  ;;  %v67_v30 = vld [vmem:[%s3237_s0 + $0xf0] sm:$0xff]  ;;  %s2420_s0 = smov 128  }
 0x1b4   :  { %v2764_v17 = vadd.f32 %v2598_v23, %v421_v1 }
 0x1b5   :  { %790 = vrot.lane.b32.xlu2 %v723_v7, %s2418_s25  ;;  %794 = vrot.lane.b32.xlu0 %v725_v3, %s2418_s25  ;;  %v236_v56 = vpop.f32.mrf.mxu0  ;;  %v508_v3 = vmul.f32 0.5, %v2749_v2 }
 0x1b6   :  { %642 = vrot.lane.b32.xlu1 %v2215_v6, %s2417_s12  ;;  %v237_v59 = vadd.f32 %v2565_v34, %v236_v56  ;;  %v511_v26 = vmul.f32 0.5, %v2764_v17  ;;  %v474_v56 = vld [vmem:[%s3238_s1 + $0x50] sm:$0xff] }
 0x1b7   :  { %v552_v10 = vmul.f32 1.442695, %v508_v3 }
 0x1b8   :  { %v282_v60 = vmax.f32 %v237_v59, 0.0  ;;  %v558_v39 = vmul.f32 1.442695, %v511_v26 }
 0x1b9   :  { %2222 = vpow2.f32 %v552_v10 }
 0x1ba   :  { %v302_v62 = vpack.c.bf16 %v282_v60, %v281_v57 }
 0x1bb   :  { %v424_v12 = vpop.f32.mrf.mxu1 }
 0x1bc   :  { %438 = vmatmul.bf16.gmra.mxu1 %v302_v62 }
 0x1bd   :  { %792 = vrot.lane.b32.xlu2 %v724_v13, %s2418_s25  ;;  %v510_v13 = vmul.f32 0.5, %v2756_v5 }
 0x1be   :  { %644 = vrot.lane.b32.xlu1 %v2217_v20, %s2417_s12 }
 0x1bf   :  { %v556_v16 = vmul.f32 1.442695, %v510_v13  ;;  %v2223_v24 = vpop.eup %2222 }
 0x1c1   :  { %2224 = vpow2.f32 %v556_v16 }
 0x1c2   :  { %2226 = vpow2.f32 %v558_v39 }
 0x1c3   :  { %v426_v28 = vpop.f32.mrf.mxu1 }
 0x1c4   :  { %v2787_v41 = vadd.f32 %v2598_v23, %v426_v28 }
 0x1c5   :  { %646 = vrot.lane.b32.xlu2 %v2219_v35, %s2417_s12  ;;  %v84_v35 = vpack.c.bf16 %v68_v32, %v67_v30 }
 0x1c6   :  { %796 = vrot.lane.b32.xlu1 %v726_v36, %s2418_s25  ;;  %v2781_v36 = vadd.f32 %v2598_v23, %v424_v12  ;;  %v513_v49 = vmul.f32 0.5, %v2787_v41 }
 0x1c7   :  { %2054 = vmatmul.msk.bf16.gmra.mxu0 %vm121_vm0, %v84_v35  ;;  %v2225_v44 = vpop.eup %2224 }
 0x1c8   :  { %v512_v47 = vmul.f32 0.5, %v2781_v36  ;;  %v562_v60 = vmul.f32 1.442695, %v513_v49  ;;  %v2227_v62 = vpop.eup %2226 }
 0x1ca   :  { %v560_v54 = vmul.f32 1.442695, %v512_v47  ;;  %v239_v57 = vpop.f32.mrf.mxu0 }
 0x1cc   :  { %2228 = vpow2.f32 %v560_v54 }
 0x1cd   :  { %2230 = vpow2.f32 %v562_v60 }
 0x1ce   :  { %650 = vrot.lane.b32.xlu1 %v2221_v46, %s2417_s12 }
 0x1e4   :  { %v429_v32 = vpop.f32.mrf.mxu1 }
 0x1e5   :  { %v2823_v49 = vadd.f32 %v2598_v23, %v429_v32 }
 0x1e7   :  { %v514_v54 = vmul.f32 0.5, %v2823_v49 }
 0x1ec   :  { %v431_v39 = vpop.f32.mrf.mxu1 }
 0x20f   :  { %v785_v61 = vpop.permute.xlu0 %784  ;;  %v791_v15 = vpop.permute.xlu2 %790 }
 0x210   :  { %v880_v7 = vadd.f32 %v785_v61, %v2601_v27  ;;  %v883_v19 = vadd.f32 %v791_v15, %v2621_v45 }
 0x217   :  { %v787_v6 = vpop.permute.xlu1 %786  ;;  %v639_v9 = vpop.permute.xlu0 %638 }
 0x218   :  { %v881_v8 = vadd.f32 %v787_v6, %v2605_v31  ;;  %v727_v11 = vmul.f32 %v639_v9, %v471_v4  ;;  %v793_v52 = vpop.permute.xlu2 %792  ;;  %v240_v4 = vadd.f32 %v2565_v34, %v239_v57  ;;  %v475_v6 = vld [vmem:[%s3238_s1 + $0x58] sm:$0xff] }
 0x219   :  { %v884_v59 = vadd.f32 %v793_v52, %v2627_v50 }
 0x21a   :  { %v912_v55 = vpack.c.bf16 %v881_v8, %v880_v7  ;;  %798 = vrot.lane.b32.xlu2 %v727_v11, %s2418_s25  ;;  %v241_v8 = vpop.f32.mrf.mxu0  ;;  %v283_v9 = vmax.f32 %v240_v4, 0.0  ;;  %v2229_v11 = vpop.eup %2228 }
 0x21b   :  { %v242_v10 = vadd.f32 %v2565_v34, %v241_v8  ;;  %v2231_v13 = vpop.eup %2230 }
 0x21c   :  { %949 = vrot.lane.b32.xlu0 %v912_v55, %s2418_s25 }
 0x21d   :  { %v284_v15 = vmax.f32 %v242_v10, 0.0 }
 0x21f   :  { %v789_v18 = vpop.permute.xlu1 %788  ;;  %v641_v21 = vpop.permute.xlu0 %640  ;;  %v303_v16 = vpack.c.bf16 %v284_v15, %v283_v9 }
 0x220   :  { %v882_v20 = vadd.f32 %v789_v18, %v2610_v37  ;;  %v728_v42 = vmul.f32 %v641_v21, %v472_v33  ;;  %v647_v7 = vpop.permute.xlu2 %646  ;;  %v477_v18 = vld [vmem:[%s3238_s1 + $0x68] sm:$0xff] }
 0x221   :  { %v731_v12 = vmul.f32 %v647_v7, %v475_v6  ;;  %443 = vmatmul.bf16.gmra.mxu1 %v303_v16  ;;  %v478_v7 = vld [vmem:[%s3238_s1 + $0x70] sm:$0xff]  ;;  %v481_v16 = vld [vmem:[%s3238_s1 + $0x88] sm:$0xff] }
 0x222   :  { %v913_v22 = vpack.c.bf16 %v883_v19, %v882_v20  ;;  %v244_v21 = vpop.f32.mrf.mxu0 }
 0x224   :  { %648 = vrot.lane.b32.xlu0 %v2223_v24, %s2417_s12  ;;  %951 = vrot.lane.b32.xlu2 %v913_v22, %s2418_s25  ;;  %v245_v22 = vadd.f32 %v2565_v34, %v244_v21 }
 0x226   :  { %v285_v26 = vmax.f32 %v245_v22, 0.0 }
 0x227   :  { %v795_v48 = vpop.permute.xlu0 %794 }
 0x228   :  { %v643_v43 = vpop.permute.xlu1 %642  ;;  %v885_v53 = vadd.f32 %v795_v48, %v2638_v58 }
 0x229   :  { %v729_v46 = vmul.f32 %v643_v43, %v473_v38 }
 0x22a   :  { %v914_v1 = vpack.c.bf16 %v885_v53, %v884_v59  ;;  %v246_v24 = vpop.f32.mrf.mxu0  ;;  %v434_v53 = vpop.f32.mrf.mxu1 }
 0x22b   :  { %802 = vrot.lane.b32.xlu1 %v729_v46, %s2418_s25  ;;  %v247_v28 = vadd.f32 %v2565_v34, %v246_v24  ;;  %v928_v46 = vld [vmem:[%s3243_s6] sm:$0xf] }
 0x22c   :  { %652 = vrot.lane.b32.xlu2 %v2225_v44, %s2417_s12  ;;  %800 = vrot.lane.b32.xlu0 %v728_v42, %s2418_s25  ;;  %v1032_v48 = vsel %vm1030_vm1, %v928_v46, 0  ;;  %v479_v46 = vld [vmem:[%s3238_s1 + $0x78] sm:$0xff] }
 0x22d   :  { %v286_v30 = vmax.f32 %v247_v28, 0.0  ;;  %1041 = vmatpush.bf16.msra.mxu2 %v1032_v48 }
 0x22f   :  { %v304_v33 = vpack.c.bf16 %v286_v30, %v285_v26 }
 0x230   :  { %v645_v61 = vpop.permute.xlu1 %644 }
 0x231   :  { %v730_v3 = vmul.f32 %v645_v61, %v474_v56  ;;  %448 = vmatmul.bf16.gmra.mxu1 %v304_v33  ;;  %v564_v56 = vmul.f32 1.442695, %v514_v54 }
 0x232   :  { %v249_v35 = vpop.f32.mrf.mxu0 }
 0x233   :  { %953 = vrot.lane.b32.xlu1 %v914_v1, %s2418_s25  ;;  %v250_v38 = vadd.f32 %v2565_v34, %v249_v35  ;;  %2232 = vpow2.f32 %v564_v56 }
 0x234   :  { %804 = vrot.lane.b32.xlu2 %v730_v3, %s2418_s25  ;;  %654 = vrot.lane.b32.xlu0 %v2227_v62, %s2417_s12  ;;  %v436_v62 = vpop.f32.mrf.mxu1 }
 0x235   :  { %v287_v43 = vmax.f32 %v250_v38, 0.0  ;;  %v2830_v1 = vadd.f32 %v2598_v23, %v436_v62  ;;  %v480_v62 = vld [vmem:[%s3238_s1 + $0x80] sm:$0xff] }
 0x237   :  { %v517_v6 = vmul.f32 0.5, %v2830_v1 }
 0x238   :  { %v797_v55 = vpop.permute.xlu1 %796 }
 0x239   :  { %v886_v59 = vadd.f32 %v797_v55, %v2644_v63  ;;  %v2233_v4 = vpop.eup %2232  ;;  %v570_v8 = vmul.f32 1.442695, %v517_v6 }
 0x23a   :  { %v251_v42 = vpop.f32.mrf.mxu0 }
 0x23b   :  { %656 = vrot.lane.b32.xlu1 %v2229_v11, %s2417_s12  ;;  %v252_v44 = vadd.f32 %v2565_v34, %v251_v42  ;;  %2234 = vpow2.f32 %v570_v8  ;;  %v2839_v11 = vadd.f32 %v2598_v23, %v431_v39 }
 0x23c   :  { %658 = vrot.lane.b32.xlu2 %v2231_v13, %s2417_s12  ;;  %806 = vrot.lane.b32.xlu0 %v731_v12, %s2418_s25  ;;  %v439_v30 = vpop.f32.mrf.mxu1 }
 0x23d   :  { %v288_v47 = vmax.f32 %v252_v44, 0.0  ;;  %v515_v15 = vmul.f32 0.5, %v2839_v11 }
 0x23f   :  { %v305_v52 = vpack.c.bf16 %v288_v47, %v287_v43 }
 0x240   :  { %v651_v19 = vpop.permute.xlu1 %650 }
 0x241   :  { %v733_v20 = vmul.f32 %v651_v19, %v477_v18  ;;  %453 = vmatmul.bf16.gmra.mxu1 %v305_v52  ;;  %v2235_v13 = vpop.eup %2234  ;;  %v476_v18 = vld [vmem:[%s3238_s1 + $0x60] sm:$0xff]  ;;  %v566_v19 = vmul.f32 1.442695, %v515_v15  ;;  %v2865_v52 = vadd.f32 %v2598_v23, %v439_v30 }
 0x243   :  { %2236 = vpow2.f32 %v566_v19 }
 0x244   :  { %810 = vrot.lane.b32.xlu2 %v733_v20, %s2418_s25  ;;  %v2851_v20 = vadd.f32 %v2598_v23, %v434_v53  ;;  %v441_v44 = vpop.f32.mrf.mxu1  ;;  %v254_v47 = vpop.f32.mrf.mxu0 }
 0x245   :  { %v2868_v54 = vadd.f32 %v2598_v23, %v441_v44 }
 0x246   :  { %v516_v28 = vmul.f32 0.5, %v2851_v20 }
 0x248   :  { %v568_v33 = vmul.f32 1.442695, %v516_v28  ;;  %v2184_v28 = vld [vmem:[%s3245_s8 + $0x28] sm:$0xff] }
 0x249   :  { %v2237_v42 = vpop.eup %2236 }
 0x24a   :  { %2238 = vpow2.f32 %v568_v33  ;;  %v2183_v33 = vld [vmem:[%s3245_s8 + $0x20] sm:$0xff] }
 0x274   :  { %v799_v57 = vpop.permute.xlu2 %798 }
 0x275   :  { %v887_v60 = vadd.f32 %v799_v57, %v2661_v25  ;;  %v2239_v57 = vpop.eup %2238 }
 0x277   :  { %v915_v61 = vpack.c.bf16 %v887_v60, %v886_v59  ;;  %v518_v59 = vmul.f32 0.5, %v2865_v52  ;;  %v255_v60 = vadd.f32 %v2565_v34, %v254_v47 }
 0x279   :  { %955 = vrot.lane.b32.xlu0 %v915_v61, %s2418_s25  ;;  %v519_v61 = vmul.f32 0.5, %v2868_v54 }
 0x27e   :  { %v952_v3 = vpop.permute.xlu2 %951 }
 0x281   :  { %660 = vrot.lane.b32.xlu0 %v2233_v4, %s2417_s12  ;;  %v572_v4 = vmul.f32 1.442695, %v518_v59 }
 0x283   :  { %2240 = vpow2.f32 %v572_v4 }
 0x286   :  { %v653_v9 = vpop.permute.xlu2 %652 }
 0x287   :  { %v734_v10 = vmul.f32 %v653_v9, %v478_v7  ;;  %v289_v7 = vmax.f32 %v255_v60, 0.0 }
 0x289   :  { %812 = vrot.lane.b32.xlu0 %v734_v10, %s2418_s25  ;;  %v574_v10 = vmul.f32 1.442695, %v519_v61  ;;  %v2179_v61 = vld [vmem:[%s3245_s8] sm:$0xff] }
 0x28b   :  { %2242 = vpow2.f32 %v574_v10 }
 0x28e   :  { %v805_v55 = vpop.permute.xlu2 %804  ;;  %v950_v12 = vpop.permute.xlu0 %949 }
 0x28f   :  { %2087 = vmatmul.msk.bf16.vlgmr.msra.gmra.mxu2 %vm981_vm2, %v950_v12  ;;  %v890_v12 = vadd.f32 %v805_v55, %v2685_v51 }
 0x291   :  { %666 = vrot.lane.b32.xlu0 %v2235_v13, %s2417_s12 }
 0x296   :  { %v659_v21 = vpop.permute.xlu2 %658  ;;  %v649_v22 = vpop.permute.xlu0 %648 }
 0x297   :  { %v737_v24 = vmul.f32 %v659_v21, %v481_v16  ;;  %v732_v26 = vmul.f32 %v649_v22, %v476_v18  ;;  %v2186_v22 = vld [vmem:[%s3245_s8 + $0x38] sm:$0xff] }
 0x298   :  { %1239 = vmatpush.bf16.msra.mxu3 %v2186_v22 }
 0x299   :  { %808 = vrot.lane.b32.xlu1 %v732_v26, %s2418_s25  ;;  %818 = vrot.lane.b32.xlu0 %v737_v24, %s2418_s25  ;;  %v2185_v24 = vld [vmem:[%s3245_s8 + $0x30] sm:$0xff] }
 0x29c   :  { %1240 = vmatpush.bf16.msra.mxu3 %v2185_v24 }
 0x29d   :  { %v803_v32 = vpop.permute.xlu1 %802 }
 0x29e   :  { %v801_v35 = vpop.permute.xlu0 %800  ;;  %v889_v38 = vadd.f32 %v803_v32, %v2676_v40  ;;  %v444_v55 = vpop.f32.mrf.mxu1 }
 0x29f   :  { %v888_v39 = vadd.f32 %v801_v35, %v2665_v29  ;;  %2088 = vmatmul.msk.bf16.gmra.mxu2 %vm981_vm2, %v952_v3  ;;  %v256_v3 = vpop.f32.mrf.mxu0  ;;  %v2925_v4 = vadd.f32 %v2598_v23, %v444_v55 }
 0x2a0   :  { %v257_v8 = vadd.f32 %v2565_v34, %v256_v3  ;;  %v2241_v34 = vpop.eup %2240  ;;  %1241 = vmatpush.bf16.msra.mxu3 %v2184_v28  ;;  %v483_v28 = vld [vmem:[%s3238_s1 + $0x98] sm:$0xff] }
 0x2a1   :  { %v916_v43 = vpack.c.bf16 %v889_v38, %v888_v39  ;;  %662 = vrot.lane.b32.xlu1 %v2237_v42, %s2417_s12  ;;  %v2243_v21 = vpop.eup %2242  ;;  %v2182_v39 = vld [vmem:[%s3245_s8 + $0x18] sm:$0xff]  ;;  %v520_v10 = vmul.f32 0.5, %v2925_v4 }
 0x2a2   :  { %v290_v16 = vmax.f32 %v257_v8, 0.0 }
 0x2a3   :  { %957 = vrot.lane.b32.xlu2 %v916_v43, %s2418_s25  ;;  %v482_v43 = vld [vmem:[%s3238_s1 + $0x90] sm:$0xff] }
 0x2a4   :  { %v306_v19 = vpack.c.bf16 %v290_v16, %v289_v7  ;;  %1242 = vmatpush.bf16.msra.mxu3 %v2183_v33  ;;  %v576_v16 = vmul.f32 1.442695, %v520_v10 }
 0x2a5   :  { %v954_v48 = vpop.permute.xlu1 %953 }
 0x2a6   :  { %v655_v53 = vpop.permute.xlu0 %654  ;;  %458 = vmatmul.bf16.gmra.mxu1 %v306_v19  ;;  %v446_v26 = vpop.f32.mrf.mxu1 }
 0x2a7   :  { %v735_v56 = vmul.f32 %v655_v53, %v479_v46  ;;  %v2896_v30 = vadd.f32 %v2598_v23, %v446_v26  ;;  %v811_v46 = vpop.permute.xlu2 %810 }
 0x2a8   :  { %1243 = vmatpush.bf16.msra.mxu3 %v2182_v39 }
 0x2a9   :  { %814 = vrot.lane.b32.xlu1 %v735_v56, %s2418_s25  ;;  %v521_v35 = vmul.f32 0.5, %v2896_v30  ;;  %v2180_v56 = vld [vmem:[%s3245_s8 + $0x8] sm:$0xff] }
 0x2ab   :  { %664 = vrot.lane.b32.xlu2 %v2239_v57, %s2417_s12  ;;  %v578_v42 = vmul.f32 1.442695, %v521_v35 }
 0x2ad   :  { %v657_v6 = vpop.permute.xlu1 %656  ;;  %2244 = vpow2.f32 %v578_v42 }
 0x2ae   :  { %v807_v9 = vpop.permute.xlu0 %806  ;;  %v736_v15 = vmul.f32 %v657_v6, %v480_v62  ;;  %v449_v38 = vpop.f32.mrf.mxu1  ;;  %v485_v62 = vld [vmem:[%s3238_s1 + $0xa8] sm:$0xff]  ;;  %2246 = vpow2.f32 %v576_v16 }
 0x2af   :  { %v891_v13 = vadd.f32 %v807_v9, %v2702_v0  ;;  %2089 = vmatmul.msk.bf16.gmra.mxu2 %vm981_vm2, %v954_v48  ;;  %v2181_v48 = vld [vmem:[%s3245_s8 + $0x10] sm:$0xff] }
 0x2b0   :  { %1244 = vmatpush.bf16.msra.mxu3 %v2181_v48  ;;  %v484_v48 = vld [vmem:[%s3238_s1 + $0xa0] sm:$0xff] }
 0x2b1   :  { %v917_v18 = vpack.c.bf16 %v891_v13, %v890_v12 }
 0x2b3   :  { %816 = vrot.lane.b32.xlu2 %v736_v15, %s2418_s25  ;;  %959 = vrot.lane.b32.xlu1 %v917_v18, %s2418_s25  ;;  %v2245_v57 = vpop.eup %2244  ;;  %v893_v15 = vadd.f32 %v811_v46, %v2717_v14 }
 0x2b4   :  { %1245 = vmatpush.bf16.msra.mxu3 %v2180_v56 }
 0x2b6   :  { %v451_v53 = vpop.f32.mrf.mxu1 }
 0x2b7   :  { %v2946_v35 = vadd.f32 %v2598_v23, %v451_v53 }
 0x2b8   :  { %1246 = vmatpush.bf16.msra.mxu3 %v2179_v61 }
 0x2bb   :  { %668 = vrot.lane.b32.xlu1 %v2241_v34, %s2417_s12  ;;  %670 = vrot.lane.b32.xlu2 %v2243_v21, %s2417_s12 }
 0x2be   :  { %v454_v3 = vpop.f32.mrf.mxu1 }
 0x2bf   :  { %v2928_v9 = vadd.f32 %v2598_v23, %v454_v3 }
 0x2c1   :  { %v524_v12 = vmul.f32 0.5, %v2928_v9 }
 0x2c3   :  { %v584_v34 = vmul.f32 1.442695, %v524_v12 }
 0x2c5   :  { %2248 = vpow2.f32 %v584_v34 }
 0x2c6   :  { %v456_v16 = vpop.f32.mrf.mxu1 }
 0x2eb   :  { %v956_v32 = vpop.permute.xlu0 %955 }
 0x2ec   :  { %2090 = vmatmul.msk.bf16.gmra.mxu2 %vm981_vm2, %v956_v32  ;;  %v2942_v32 = vadd.f32 %v2598_v23, %v449_v38 }
 0x2ee   :  { %v522_v46 = vmul.f32 0.5, %v2942_v32 }
 0x2f0   :  { %v580_v56 = vmul.f32 1.442695, %v522_v46 }
 0x2f2   :  { %2250 = vpow2.f32 %v580_v56 }
 0x2f3   :  { %v661_v44 = vpop.permute.xlu0 %660 }
 0x2f4   :  { %v738_v47 = vmul.f32 %v661_v44, %v482_v43  ;;  %v2951_v43 = vld [vmem:[%s3244_s7] ss:$0 sm:$0xff]  ;;  %v2247_v44 = vpop.eup %2246 }
 0x2f5   :  { %v2249_v38 = vpop.eup %2248 }
 0x2f6   :  { %820 = vrot.lane.b32.xlu1 %v738_v47, %s2418_s25  ;;  %v523_v47 = vmul.f32 0.5, %v2946_v35 }
 0x2fb   :  { %v813_v59 = vpop.permute.xlu0 %812 }
 0x2fc   :  { %v894_v3 = vadd.f32 %v813_v59, %v2756_v5  ;;  %v2251_v59 = vpop.eup %2250 }
 0x2fd   :  { %v958_v60 = vpop.permute.xlu2 %957 }
 0x2fe   :  { %2091 = vmatmul.msk.bf16.gmra.mxu2 %vm981_vm2, %v958_v60  ;;  %674 = vrot.lane.b32.xlu1 %v2245_v57, %s2417_s12  ;;  %v582_v60 = vmul.f32 1.442695, %v523_v47 }
 0x300   :  { %2252 = vpow2.f32 %v582_v60 }
 0x303   :  { %v667_v6 = vpop.permute.xlu0 %666 }
 0x304   :  { %v741_v7 = vmul.f32 %v667_v6, %v485_v62 }
 0x305   :  { %v665_v8 = vpop.permute.xlu2 %664 }
 0x306   :  { %826 = vrot.lane.b32.xlu1 %v741_v7, %s2418_s25  ;;  %v740_v6 = vmul.f32 %v665_v8, %v484_v48  ;;  %v2253_v8 = vpop.eup %2252 }
 0x30b   :  { %v809_v13 = vpop.permute.xlu1 %808  ;;  %v819_v19 = vpop.permute.xlu0 %818 }
 0x30c   :  { %v892_v18 = vadd.f32 %v809_v13, %v2749_v2  ;;  %v897_v22 = vadd.f32 %v819_v19, %v2787_v41  ;;  %v2968_v19 = vadd.f32 %v2598_v23, %v456_v16 }
 0x30d   :  { %v817_v21 = vpop.permute.xlu2 %816 }
 0x30e   :  { %v918_v55 = vpack.c.bf16 %v893_v15, %v892_v18  ;;  %v896_v24 = vadd.f32 %v817_v21, %v2781_v36  ;;  %v525_v21 = vmul.f32 0.5, %v2968_v19 }
 0x310   :  { %v920_v26 = vpack.c.bf16 %v897_v22, %v896_v24  ;;  %961 = vrot.lane.b32.xlu0 %v918_v55, %s2418_s25  ;;  %v487_v22 = vld [vmem:[%s3238_s1 + $0xb8] sm:$0xff] }
 0x312   :  { %v1043_v33 = vpop.f32.mrf.mxu2  ;;  %965 = vrot.lane.b32.xlu1 %v920_v26, %s2418_s25 }
 0x313   :  { %v663_v39 = vpop.permute.xlu1 %662  ;;  %v1044_v53 = vadd.f32 %v2951_v43, %v1043_v33  ;;  %v586_v33 = vmul.f32 1.442695, %v525_v21 }
 0x314   :  { %v739_v42 = vmul.f32 %v663_v39, %v483_v28  ;;  %v486_v28 = vld [vmem:[%s3238_s1 + $0xb0] sm:$0xff] }
 0x315   :  { %v1123_v10 = vmax.f32 %v1044_v53, 0.0  ;;  %v671_v24 = vpop.permute.xlu2 %670  ;;  %2254 = vpow2.f32 %v586_v33 }
 0x316   :  { %822 = vrot.lane.b32.xlu2 %v739_v42, %s2418_s25  ;;  %v743_v39 = vmul.f32 %v671_v24, %v487_v22 }
 0x318   :  { %672 = vrot.lane.b32.xlu0 %v2247_v44, %s2417_s12 }
 0x31a   :  { %v1045_v57 = vpop.f32.mrf.mxu2  ;;  %680 = vrot.lane.b32.xlu1 %v2249_v38, %s2417_s12 }
 0x31b   :  { %v1046_v61 = vadd.f32 %v2951_v43, %v1045_v57  ;;  %v815_v62 = vpop.permute.xlu1 %814  ;;  %v2255_v53 = vpop.eup %2254 }
 0x31c   :  { %v895_v7 = vadd.f32 %v815_v62, %v2764_v17 }
 0x31d   :  { %v1124_v12 = vmax.f32 %v1046_v61, 0.0 }
 0x31e   :  { %v919_v13 = vpack.c.bf16 %v895_v7, %v894_v3  ;;  %v2388_v7 = vld [vmem:[%s3242_s5] ss:$0 sm:$0xff] }
 0x31f   :  { %v1155_v15 = vpack.c.bf16 %v1124_v12, %v1123_v10 }
 0x320   :  { %824 = vrot.lane.b32.xlu0 %v740_v6, %s2418_s25  ;;  %963 = vrot.lane.b32.xlu2 %v919_v13, %s2418_s25 }
 0x321   :  { %1247 = vmatmul.bf16.vlgmr.msra.gmra.mxu3 %v1155_v15  ;;  %v489_v15 = vld [vmem:[%s3238_s1 + $0xc8] sm:$0xff] }
 0x322   :  { %v1048_v18 = vpop.f32.mrf.mxu2 }
 0x323   :  { %v1049_v55 = vadd.f32 %v2951_v43, %v1048_v18  ;;  %v459_v6 = vpop.f32.mrf.mxu1 }
 0x324   :  { %v2990_v10 = vadd.f32 %v2388_v7, %v459_v6  ;;  %v488_v6 = vld [vmem:[%s3238_s1 + $0xc0] sm:$0xff] }
 0x325   :  { %v960_v34 = vpop.permute.xlu1 %959  ;;  %v1125_v42 = vmax.f32 %v1049_v55, 0.0 }
 0x326   :  { %2092 = vmatmul.msk.bf16.gmra.mxu2 %vm981_vm2, %v960_v34  ;;  %v526_v13 = vmul.f32 0.5, %v2990_v10 }
 0x328   :  { %678 = vrot.lane.b32.xlu0 %v2253_v8, %s2417_s12  ;;  %676 = vrot.lane.b32.xlu2 %v2251_v59, %s2417_s12  ;;  %v588_v16 = vmul.f32 1.442695, %v526_v13 }
 0x32a   :  { %v1050_v23 = vpop.f32.mrf.mxu2  ;;  %2256 = vpow2.f32 %v588_v16  ;;  %v492_v16 = vld [vmem:[%s3238_s1 + $0xe0] sm:$0xff] }
 0x32b   :  { %v1051_v26 = vadd.f32 %v2951_v43, %v1050_v23 }
 0x32d   :  { %v1126_v44 = vmax.f32 %v1051_v26, 0.0  ;;  %v669_v46 = vpop.permute.xlu1 %668 }
 0x32e   :  { %v742_v38 = vmul.f32 %v669_v46, %v486_v28 }
 0x32f   :  { %v1156_v47 = vpack.c.bf16 %v1126_v44, %v1125_v42 }
 0x330   :  { %830 = vrot.lane.b32.xlu0 %v743_v39, %s2418_s25  ;;  %828 = vrot.lane.b32.xlu2 %v742_v38, %s2418_s25  ;;  %v2257_v28 = vpop.eup %2256  ;;  %v461_v38 = vpop.f32.mrf.mxu1 }
 0x331   :  { %1252 = vmatmul.bf16.gmra.mxu3 %v1156_v47  ;;  %v490_v47 = vld [vmem:[%s3238_s1 + $0xd0] sm:$0xff] }
 0x332   :  { %v1053_v48 = vpop.f32.mrf.mxu2 }
 0x333   :  { %v1054_v56 = vadd.f32 %v2951_v43, %v1053_v48 }
 0x335   :  { %v1127_v61 = vmax.f32 %v1054_v56, 0.0 }
 0x338   :  { %682 = vrot.lane.b32.xlu2 %v2255_v53, %s2417_s12  ;;  %v3006_v53 = vadd.f32 %v2388_v7, %v461_v38 }
 0x33a   :  { %v1055_v57 = vpop.f32.mrf.mxu2 }
 0x33b   :  { %v1056_v60 = vadd.f32 %v2951_v43, %v1055_v57 }
 0x33d   :  { %v1128_v62 = vmax.f32 %v1056_v60, 0.0 }
 0x33f   :  { %v1157_v3 = vpack.c.bf16 %v1128_v62, %v1127_v61  ;;  %v527_v62 = vmul.f32 0.5, %v3006_v53 }
 0x341   :  { %1257 = vmatmul.bf16.gmra.mxu3 %v1157_v3  ;;  %v590_v13 = vmul.f32 1.442695, %v527_v62 }
 0x343   :  { %2258 = vpow2.f32 %v590_v13 }
 0x368   :  { %v821_v12 = vpop.permute.xlu1 %820 }
 0x369   :  { %v898_v8 = vadd.f32 %v821_v12, %v2823_v49 }
 0x36f   :  { %v1058_v18 = vpop.f32.mrf.mxu2 }
 0x370   :  { %v823_v59 = vpop.permute.xlu2 %822  ;;  %v675_v21 = vpop.permute.xlu1 %674  ;;  %v1059_v24 = vadd.f32 %v2951_v43, %v1058_v18 }
 0x371   :  { %v899_v34 = vadd.f32 %v823_v59, %v2839_v11  ;;  %v745_v55 = vmul.f32 %v675_v21, %v489_v15 }
 0x372   :  { %v1129_v39 = vmax.f32 %v1059_v24, 0.0 }
 0x373   :  { %v921_v22 = vpack.c.bf16 %v899_v34, %v898_v8  ;;  %834 = vrot.lane.b32.xlu2 %v745_v55, %s2418_s25 }
 0x375   :  { %967 = vrot.lane.b32.xlu0 %v921_v22, %s2418_s25 }
 0x377   :  { %v1060_v23 = vpop.f32.mrf.mxu2 }
 0x378   :  { %v1061_v26 = vadd.f32 %v2951_v43, %v1060_v23  ;;  %v827_v44 = vpop.permute.xlu1 %826 }
 0x379   :  { %v901_v24 = vadd.f32 %v827_v44, %v2830_v1  ;;  %v493_v44 = vld [vmem:[%s3238_s1 + $0xe8] sm:$0xff] }
 0x37a   :  { %v964_v33 = vpop.permute.xlu2 %963  ;;  %v1130_v42 = vmax.f32 %v1061_v26, 0.0  ;;  %v2259_v26 = vpop.eup %2258 }
 0x37c   :  { %v1158_v46 = vpack.c.bf16 %v1130_v42, %v1129_v39  ;;  %v491_v42 = vld [vmem:[%s3238_s1 + $0xd8] sm:$0xff] }
 0x37d   :  { %684 = vrot.lane.b32.xlu0 %v2257_v28, %s2417_s12 }
 0x37e   :  { %1262 = vmatmul.bf16.gmra.mxu3 %v1158_v46 }
 0x381   :  { %v1063_v48 = vpop.f32.mrf.mxu2 }
 0x382   :  { %v677_v56 = vpop.permute.xlu2 %676  ;;  %v962_v57 = vpop.permute.xlu0 %961  ;;  %v1064_v3 = vadd.f32 %v2951_v43, %v1063_v48  ;;  %v3036_v48 = vld [vmem:[%s3246_s9] ss:$0 sm:$0xff] }
 0x383   :  { %v746_v60 = vmul.f32 %v677_v56, %v490_v47  ;;  %2093 = vmatmul.msk.bf16.gmra.mxu2 %vm981_vm2, %v962_v57 }
 0x384   :  { %v966_v61 = vpop.permute.xlu1 %965  ;;  %v1131_v59 = vmax.f32 %v1064_v3, 0.0 }
 0x385   :  { %836 = vrot.lane.b32.xlu0 %v746_v60, %s2418_s25 }
 0x389   :  { %v1065_v12 = vpop.f32.mrf.mxu2 }
 0x38a   :  { %v1066_v7 = vadd.f32 %v2951_v43, %v1065_v12  ;;  %v673_v15 = vpop.permute.xlu0 %672  ;;  %v829_v39 = vpop.permute.xlu2 %828 }
 0x38b   :  { %v744_v18 = vmul.f32 %v673_v15, %v488_v6  ;;  %v902_v57 = vadd.f32 %v829_v39, %v2865_v52 }
 0x38c   :  { %v1132_v8 = vmax.f32 %v1066_v7, 0.0  ;;  %v681_v34 = vpop.permute.xlu1 %680 }
 0x38d   :  { %v748_v21 = vmul.f32 %v681_v34, %v492_v16  ;;  %832 = vrot.lane.b32.xlu1 %v744_v18, %s2418_s25 }
 0x38e   :  { %v1159_v55 = vpack.c.bf16 %v1132_v8, %v1131_v59 }
 0x38f   :  { %840 = vrot.lane.b32.xlu0 %v748_v21, %s2418_s25  ;;  %v1936_v21 = vlaneseq }
 0x390   :  { %1267 = vmatmul.bf16.gmra.mxu3 %v1159_v55 }
 0x392   :  { %v825_v22 = vpop.permute.xlu0 %824 }
 0x393   :  { %v900_v23 = vadd.f32 %v825_v22, %v2851_v20  ;;  %2094 = vmatmul.msk.bf16.gmra.mxu2 %vm981_vm2, %v964_v33  ;;  %v683_v33 = vpop.permute.xlu2 %682 }
 0x394   :  { %v749_v47 = vmul.f32 %v683_v33, %v493_v44 }
 0x395   :  { %v922_v28 = vpack.c.bf16 %v901_v24, %v900_v23  ;;  %686 = vrot.lane.b32.xlu1 %v2259_v26, %s2417_s12 }
 0x397   :  { %969 = vrot.lane.b32.xlu2 %v922_v28, %s2418_s25 }
 0x39a   :  { %v679_v46 = vpop.permute.xlu0 %678 }
 0x39b   :  { %v747_v38 = vmul.f32 %v679_v46, %v491_v42  ;;  %v1937_v46 = vand.u32 127, %v1936_v21 }
 0x39d   :  { %838 = vrot.lane.b32.xlu1 %v747_v38, %s2418_s25  ;;  %vm1938_vm3 = vcmp.ge.s32.totalorder %v1937_v46, 64  ;;  %vm1939_vm4 = vcmp.lt.s32.totalorder %v1937_v46, 80 }
 0x39e   :  { %vm3049_vm7 = vmand %vm1938_vm3, %vm1939_vm4 }
 0x3a2   :  { %v831_v56 = vpop.permute.xlu0 %830 }
 0x3a3   :  { %v903_v60 = vadd.f32 %v831_v56, %v2868_v54  ;;  %2095 = vmatmul.msk.bf16.gmra.mxu2 %vm981_vm2, %v966_v61 }
 0x3a4   :  { %v1248_v62 = vpop.f32.mrf.mxu3 }
 0x3a5   :  { %v923_v3 = vpack.c.bf16 %v903_v60, %v902_v57  ;;  %v1249_v6 = vadd.f32 %v3036_v48, %v1248_v62  ;;  %842 = vrot.lane.b32.xlu1 %v749_v47, %s2418_s25 }
 0x3a7   :  { %v2135_v12 = vmul.f32 -1.442695, %v1249_v6  ;;  %971 = vrot.lane.b32.xlu2 %v923_v3, %s2418_s25 }
 0x3a9   :  { %2260 = vpow2.f32 %v2135_v12  ;;  %v1068_v13 = vpop.f32.mrf.mxu2 }
 0x3aa   :  { %v1069_v8 = vadd.f32 %v2951_v43, %v1068_v13 }
 0x3ac   :  { %v1250_v7 = vpop.f32.mrf.mxu3  ;;  %v1133_v22 = vmax.f32 %v1069_v8, 0.0 }
 0x3ad   :  { %v1251_v15 = vadd.f32 %v3036_v48, %v1250_v7 }
 0x3af   :  { %v2261_v16 = vpop.eup %2260  ;;  %v2136_v18 = vmul.f32 -1.442695, %v1251_v15 }
 0x3b0   :  { %v1424_v59 = vadd.f32 1.0, %v2261_v16 }
 0x3b1   :  { %2262 = vpow2.f32 %v2136_v18  ;;  %v1070_v61 = vpop.f32.mrf.mxu2 }
 0x3b2   :  { %2264 = vrcp.f32 %v1424_v59  ;;  %v1071_v34 = vadd.f32 %v2951_v43, %v1070_v61  ;;  %v1467_v47 = vand.u32 2147483648, %v1424_v59  ;;  %v1465_v60 = vand.u32 2147483647, %v1424_v59 }
 0x3b3   :  { %vm1461_vm6 = vweird.f32 %v1424_v59 }
 0x3b4   :  { %v1253_v55 = vpop.f32.mrf.mxu3  ;;  %v1134_v24 = vmax.f32 %v1071_v34, 0.0  ;;  %v1468_v15 = vor.u32 1.1754944e-38, %v1467_v47  ;;  %vm1466_vm9 = vcmp.eq.f32.partialorder %v1465_v60, 8.507059e+37 }
 0x3b5   :  { %v1254_v23 = vadd.f32 %v3036_v48, %v1253_v55 }
 0x3b6   :  { %v1160_v39 = vpack.c.bf16 %v1134_v24, %v1133_v22 }
 0x3b7   :  { %v2263_v26 = vpop.eup %2262  ;;  %v2137_v28 = vmul.f32 -1.442695, %v1254_v23 }
 0x3b8   :  { %v2265_v42 = vpop.eup %2264  ;;  %v1425_v38 = vadd.f32 1.0, %v2263_v26  ;;  %1272 = vmatmul.bf16.gmra.mxu3 %v1160_v39 }
 0x3b9   :  { %v1457_v44 = vmul.f32 %v2265_v42, %v1424_v59  ;;  %2266 = vpow2.f32 %v2137_v28  ;;  %vm1462_vm5 = vweird.f32 %v2265_v42 }
 0x3ba   :  { %2268 = vrcp.f32 %v1425_v38  ;;  %vm1463_vm8 = vmor %vm1461_vm6, %vm1462_vm5  ;;  %v1482_v21 = vand.u32 2147483648, %v1425_v38  ;;  %v1480_v24 = vand.u32 2147483647, %v1425_v38  ;;  %vm1476_vm11 = vweird.f32 %v1425_v38 }
 0x3bb   :  { %v1458_v33 = vsub.f32 1.0, %v1457_v44 }
 0x3bc   :  { %v1255_v56 = vpop.f32.mrf.mxu3  ;;  %v1483_v46 = vor.u32 1.1754944e-38, %v1482_v21  ;;  %vm1481_vm13 = vcmp.eq.f32.partialorder %v1480_v24, 8.507059e+37 }
 0x3bd   :  { %v1459_v57 = vmul.f32 %v2265_v42, %v1458_v33  ;;  %v1256_v62 = vadd.f32 %v3036_v48, %v1255_v56 }
 0x3bf   :  { %v2267_v3 = vpop.eup %2266  ;;  %v1460_v6 = vadd.f32 %v2265_v42, %v1459_v57  ;;  %v2138_v13 = vmul.f32 -1.442695, %v1256_v62 }
 0x3c0   :  { %v2269_v7 = vpop.eup %2268  ;;  %v1426_v16 = vadd.f32 1.0, %v2267_v3 }
 0x3c1   :  { %v1464_v18 = vsel %vm1463_vm8, %v2265_v42, %v1460_v6  ;;  %v1472_v8 = vmul.f32 %v2269_v7, %v1425_v38  ;;  %2270 = vpow2.f32 %v2138_v13  ;;  %vm1477_vm10 = vweird.f32 %v2269_v7 }
 0x3c2   :  { %v1469_v61 = vsel %vm1466_vm9, %v1468_v15, %v1464_v18  ;;  %2272 = vrcp.f32 %v1426_v16  ;;  %vm1478_vm12 = vmor %vm1476_vm11, %vm1477_vm10  ;;  %v1497_v60 = vand.u32 2147483648, %v1426_v16  ;;  %v1495_v3 = vand.u32 2147483647, %v1426_v16 }
 0x3c3   :  { %v1941_v34 = vsel %vm3049_vm7, %v2601_v27, %v1469_v61  ;;  %v1473_v59 = vsub.f32 1.0, %v1472_v8  ;;  %vm1491_vm15 = vweird.f32 %v1426_v16 }
 0x3c4   :  { %1973 = vst [vmem:[#allocation2] sm:$0xff] %v1941_v34  ;;  %v1258_v55 = vpop.f32.mrf.mxu3  ;;  %v1498_v8 = vor.u32 1.1754944e-38, %v1497_v60  ;;  %vm1496_vm1 = vcmp.eq.f32.partialorder %v1495_v3, 8.507059e+37 }
 0x3c5   :  { %v1474_v22 = vmul.f32 %v2269_v7, %v1473_v59  ;;  %v1259_v23 = vadd.f32 %v3036_v48, %v1258_v55 }
 0x3c7   :  { %v2271_v26 = vpop.eup %2270  ;;  %v1475_v28 = vadd.f32 %v2269_v7, %v1474_v22  ;;  %v2139_v39 = vmul.f32 -1.442695, %v1259_v23 }
 0x3c8   :  { %v2273_v42 = vpop.eup %2272  ;;  %v1427_v44 = vadd.f32 1.0, %v2271_v26 }
 0x3c9   :  { %v1479_v33 = vsel %vm1478_vm12, %v2269_v7, %v1475_v28  ;;  %v1487_v27 = vmul.f32 %v2273_v42, %v1426_v16  ;;  %2274 = vpow2.f32 %v2139_v39  ;;  %vm1492_vm14 = vweird.f32 %v2273_v42 }
 0x3ca   :  { %v1484_v47 = vsel %vm1481_vm13, %v1483_v46, %v1479_v33  ;;  %2276 = vrcp.f32 %v1427_v44  ;;  %vm1493_vm0 = vmor %vm1491_vm15, %vm1492_vm14  ;;  %v1512_v22 = vand.u32 2147483648, %v1427_v44  ;;  %v1510_v16 = vand.u32 2147483647, %v1427_v44 }
 0x3cb   :  { %v1942_v56 = vsel %vm3049_vm7, %v2605_v31, %v1484_v47  ;;  %v1488_v57 = vsub.f32 1.0, %v1487_v27  ;;  %vm1506_vm4 = vweird.f32 %v1427_v44 }
 0x3cc   :  { %1974 = vst [vmem:[#allocation2 + $0x8] sm:$0xff] %v1942_v56  ;;  %v1260_v62 = vpop.f32.mrf.mxu3  ;;  %v1513_v39 = vor.u32 1.1754944e-38, %v1512_v22  ;;  %vm1511_vm6 = vcmp.eq.f32.partialorder %v1510_v16, 8.507059e+37 }
 0x3cd   :  { %v1489_v38 = vmul.f32 %v2273_v42, %v1488_v57  ;;  %v1261_v6 = vadd.f32 %v3036_v48, %v1260_v62  ;;  %v835_v22 = vpop.permute.xlu2 %834 }
 0x3cf   :  { %v2275_v13 = vpop.eup %2274  ;;  %v1490_v7 = vadd.f32 %v2273_v42, %v1489_v38  ;;  %v2140_v15 = vmul.f32 -1.442695, %v1261_v6 }
 0x3d0   :  { %v2277_v18 = vpop.eup %2276  ;;  %v1428_v61 = vadd.f32 1.0, %v2275_v13 }
 0x3d1   :  { %v1494_v34 = vsel %vm1493_vm0, %v2273_v42, %v1490_v7  ;;  %v1502_v31 = vmul.f32 %v2277_v18, %v1427_v44  ;;  %2278 = vpow2.f32 %v2140_v15  ;;  %vm1507_vm3 = vweird.f32 %v2277_v18 }
 0x3d2   :  { %v1499_v59 = vsel %vm1496_vm1, %v1498_v8, %v1494_v34  ;;  %2280 = vrcp.f32 %v1428_v61  ;;  %vm1508_vm5 = vmor %vm1506_vm4, %vm1507_vm3  ;;  %v1527_v56 = vand.u32 2147483648, %v1428_v61  ;;  %v1525_v60 = vand.u32 2147483647, %v1428_v61 }
 0x3d3   :  { %v1943_v21 = vsel %vm3049_vm7, %v2610_v37, %v1499_v59  ;;  %v1503_v55 = vsub.f32 1.0, %v1502_v31  ;;  %vm1521_vm9 = vweird.f32 %v1428_v61 }
 0x3d4   :  { %1975 = vst [vmem:[#allocation2 + $0x10] sm:$0xff] %v1943_v21  ;;  %v1528_v38 = vor.u32 1.1754944e-38, %v1527_v56  ;;  %vm1526_vm11 = vcmp.eq.f32.partialorder %v1525_v60, 8.507059e+37 }
 0x3d5   :  { %v1504_v24 = vmul.f32 %v2277_v18, %v1503_v55  ;;  %v494_v55 = vld [vmem:[%s3238_s1 + $0xf0] sm:$0xff] }
 0x3d7   :  { %v2279_v23 = vpop.eup %2278  ;;  %v1505_v26 = vadd.f32 %v2277_v18, %v1504_v24 }
 0x3d8   :  { %v2281_v28 = vpop.eup %2280  ;;  %v1429_v42 = vadd.f32 1.0, %v2279_v23 }
 0x3d9   :  { %v1509_v46 = vsel %vm1508_vm5, %v2277_v18, %v1505_v26  ;;  %v1517_v33 = vmul.f32 %v2281_v28, %v1428_v61  ;;  %vm1522_vm8 = vweird.f32 %v2281_v28 }
 0x3da   :  { %v1514_v27 = vsel %vm1511_vm6, %v1513_v39, %v1509_v46  ;;  %2282 = vrcp.f32 %v1429_v42  ;;  %vm1523_vm10 = vmor %vm1521_vm9, %vm1522_vm8  ;;  %v1542_v15 = vand.u32 2147483648, %v1429_v42  ;;  %v1540_v8 = vand.u32 2147483647, %v1429_v42 }
 0x3db   :  { %v1944_v37 = vsel %vm3049_vm7, %v2621_v45, %v1514_v27  ;;  %v1518_v47 = vsub.f32 1.0, %v1517_v33  ;;  %vm1536_vm13 = vweird.f32 %v1429_v42  ;;  %v495_v27 = vld [vmem:[%s3238_s1 + $0xf8] sm:$0xff] }
 0x3dc   :  { %1976 = vst [vmem:[#allocation2 + $0x18] sm:$0xff] %v1944_v37  ;;  %v1543_v31 = vor.u32 1.1754944e-38, %v1542_v15  ;;  %vm1541_vm15 = vcmp.eq.f32.partialorder %v1540_v8, 8.507059e+37 }
 0x3dd   :  { %v1519_v57 = vmul.f32 %v2281_v28, %v1518_v47 }
 0x3df   :  { %v1520_v44 = vadd.f32 %v2281_v28, %v1519_v57 }
 0x3e0   :  { %v2283_v62 = vpop.eup %2282 }
 0x3e1   :  { %v1524_v3 = vsel %vm1523_vm10, %v2281_v28, %v1520_v44  ;;  %v1532_v6 = vmul.f32 %v2283_v62, %v1429_v42  ;;  %vm1537_vm12 = vweird.f32 %v2283_v62  ;;  %v905_v28 = vadd.f32 %v835_v22, %v2896_v30 }
 0x3e2   :  { %v1529_v13 = vsel %vm1526_vm11, %v1528_v38, %v1524_v3  ;;  %vm1538_vm14 = vmor %vm1536_vm13, %vm1537_vm12 }
 0x3e3   :  { %v1945_v7 = vsel %vm3049_vm7, %v2627_v50, %v1529_v13  ;;  %v1533_v45 = vsub.f32 1.0, %v1532_v6 }
 0x3e4   :  { %1977 = vst [vmem:[#allocation2 + $0x20] sm:$0xff] %v1945_v7 }
 0x3e5   :  { %v1534_v18 = vmul.f32 %v2283_v62, %v1533_v45 }
 0x3e7   :  { %v1535_v34 = vadd.f32 %v2283_v62, %v1534_v18  ;;  %v968_v61 = vpop.permute.xlu0 %967 }
 0x3e8   :  { %2096 = vmatmul.msk.bf16.gmra.mxu2 %vm981_vm2, %v968_v61 }
 0x3e9   :  { %v1539_v59 = vsel %vm1538_vm14, %v2283_v62, %v1535_v34 }
 0x3ea   :  { %v1544_v21 = vsel %vm1541_vm15, %v1543_v31, %v1539_v59 }
 0x3eb   :  { %v1946_v50 = vsel %vm3049_vm7, %v2638_v58, %v1544_v21 }
 0x3ec   :  { %1978 = vst [vmem:[#allocation2 + $0x28] sm:$0xff] %v1946_v50 }
 0x3ef   :  { %v685_v24 = vpop.permute.xlu0 %684 }
 0x3f0   :  { %v750_v16 = vmul.f32 %v685_v24, %v494_v55 }
 0x3f1   :  { %v970_v23 = vpop.permute.xlu2 %969 }
 0x3f2   :  { %844 = vrot.lane.b32.xlu0 %v750_v16, %s2418_s25 }
 0x3f7   :  { %v837_v6 = vpop.permute.xlu0 %836 }
 0x3f8   :  { %2097 = vmatmul.msk.bf16.gmra.mxu2 %vm981_vm2, %v970_v23  ;;  %v906_v18 = vadd.f32 %v837_v6, %v2942_v32 }
 0x3ff   :  { %v833_v26 = vpop.permute.xlu1 %832 }
 0x400   :  { %v904_v39 = vadd.f32 %v833_v26, %v2925_v4 }
 0x401   :  { %v1263_v58 = vpop.f32.mrf.mxu3  ;;  %v972_v47 = vpop.permute.xlu2 %971 }
 0x402   :  { %v924_v42 = vpack.c.bf16 %v905_v28, %v904_v39  ;;  %v1264_v46 = vadd.f32 %v3036_v48, %v1263_v58  ;;  %v841_v24 = vpop.permute.xlu0 %840 }
 0x403   :  { %v908_v58 = vadd.f32 %v841_v24, %v2928_v9 }
 0x404   :  { %973 = vrot.lane.b32.xlu2 %v924_v42, %s2418_s25  ;;  %v2141_v33 = vmul.f32 -1.442695, %v1264_v46 }
 0x406   :  { %v1073_v37 = vpop.f32.mrf.mxu2  ;;  %2284 = vpow2.f32 %v2141_v33 }
 0x407   :  { %v687_v56 = vpop.permute.xlu1 %686  ;;  %v1074_v38 = vadd.f32 %v2951_v43, %v1073_v37 }
 0x408   :  { %v751_v57 = vmul.f32 %v687_v56, %v495_v27  ;;  %2098 = vmatmul.msk.bf16.gmra.mxu2 %vm981_vm2, %v972_v47 }
 0x409   :  { %v1265_v60 = vpop.f32.mrf.mxu3  ;;  %v1135_v8 = vmax.f32 %v1074_v38, 0.0 }
 0x40a   :  { %846 = vrot.lane.b32.xlu1 %v751_v57, %s2418_s25  ;;  %v1266_v44 = vadd.f32 %v3036_v48, %v1265_v60 }
 0x40c   :  { %v2285_v62 = vpop.eup %2284  ;;  %v2142_v3 = vmul.f32 -1.442695, %v1266_v44 }
 0x40d   :  { %v1430_v13 = vadd.f32 1.0, %v2285_v62 }
 0x40e   :  { %v1075_v7 = vpop.f32.mrf.mxu2  ;;  %2286 = vpow2.f32 %v2142_v3 }
 0x40f   :  { %v1076_v45 = vadd.f32 %v2951_v43, %v1075_v7  ;;  %v839_v15 = vpop.permute.xlu1 %838  ;;  %2288 = vrcp.f32 %v1430_v13  ;;  %v1557_v33 = vand.u32 2147483648, %v1430_v13  ;;  %v1555_v37 = vand.u32 2147483647, %v1430_v13 }
 0x410   :  { %v907_v61 = vadd.f32 %v839_v15, %v2946_v35  ;;  %vm1551_vm1 = vweird.f32 %v1430_v13 }
 0x411   :  { %v1136_v34 = vmax.f32 %v1076_v45, 0.0  ;;  %v1558_v38 = vor.u32 1.1754944e-38, %v1557_v33  ;;  %vm1556_vm4 = vcmp.eq.f32.partialorder %v1555_v37, 8.507059e+37 }
 0x412   :  { %v925_v31 = vpack.c.bf16 %v907_v61, %v906_v18 }
 0x413   :  { %v1268_v59 = vpop.f32.mrf.mxu3  ;;  %v1161_v21 = vpack.c.bf16 %v1136_v34, %v1135_v8 }
 0x414   :  { %v1269_v50 = vadd.f32 %v3036_v48, %v1268_v59  ;;  %v2287_v55 = vpop.eup %2286  ;;  %975 = vrot.lane.b32.xlu2 %v925_v31, %s2418_s25 }
 0x415   :  { %1277 = vmatmul.bf16.gmra.mxu3 %v1161_v21  ;;  %v2289_v22 = vpop.eup %2288  ;;  %v1431_v16 = vadd.f32 1.0, %v2287_v55 }
 0x416   :  { %v2143_v23 = vmul.f32 -1.442695, %v1269_v50  ;;  %v1078_v26 = vpop.f32.mrf.mxu2  ;;  %v1547_v28 = vmul.f32 %v2289_v22, %v1430_v13  ;;  %vm1552_vm0 = vweird.f32 %v2289_v22 }
 0x417   :  { %v843_v39 = vpop.permute.xlu1 %842  ;;  %2290 = vrcp.f32 %v1431_v16  ;;  %v1079_v44 = vadd.f32 %v2951_v43, %v1078_v26  ;;  %vm1553_vm3 = vmor %vm1551_vm1, %vm1552_vm0  ;;  %v1572_v21 = vand.u32 2147483648, %v1431_v16  ;;  %v1570_v55 = vand.u32 2147483647, %v1431_v16 }
 0x418   :  { %v1548_v42 = vsub.f32 1.0, %v1547_v28  ;;  %2292 = vpow2.f32 %v2143_v23  ;;  %v909_v46 = vadd.f32 %v843_v39, %v2968_v19  ;;  %vm1566_vm6 = vweird.f32 %v1431_v16 }
 0x419   :  { %v1137_v31 = vmax.f32 %v1079_v44, 0.0  ;;  %v1573_v26 = vor.u32 1.1754944e-38, %v1572_v21  ;;  %vm1571_vm9 = vcmp.eq.f32.partialorder %v1570_v55, 8.507059e+37 }
 0x41a   :  { %v1549_v27 = vmul.f32 %v2289_v22, %v1548_v42  ;;  %v926_v47 = vpack.c.bf16 %v909_v46, %v908_v58 }
 0x41b   :  { %v1270_v56 = vpop.f32.mrf.mxu3 }
 0x41c   :  { %v1271_v57 = vadd.f32 %v3036_v48, %v1270_v56  ;;  %v1550_v60 = vadd.f32 %v2289_v22, %v1549_v27  ;;  %977 = vrot.lane.b32.xlu0 %v926_v47, %s2418_s25 }
 0x41d   :  { %v2291_v62 = vpop.eup %2290 }
 0x41e   :  { %v2144_v3 = vmul.f32 -1.442695, %v1271_v57  ;;  %v1080_v6 = vpop.f32.mrf.mxu2  ;;  %v2293_v7 = vpop.eup %2292  ;;  %v1554_v45 = vsel %vm1553_vm3, %v2289_v22, %v1550_v60  ;;  %v1562_v15 = vmul.f32 %v2291_v62, %v1431_v16  ;;  %vm1567_vm5 = vweird.f32 %v2291_v62 }
 0x41f   :  { %v1081_v18 = vadd.f32 %v2951_v43, %v1080_v6  ;;  %v1559_v8 = vsel %vm1556_vm4, %v1558_v38, %v1554_v45  ;;  %v1432_v34 = vadd.f32 1.0, %v2293_v7  ;;  %vm1568_vm8 = vmor %vm1566_vm6, %vm1567_vm5 }
 0x420   :  { %2294 = vpow2.f32 %v2144_v3  ;;  %v1947_v13 = vsel %vm3049_vm7, %v2644_v63, %v1559_v8  ;;  %v1563_v61 = vsub.f32 1.0, %v1562_v15 }
 0x421   :  { %v1138_v59 = vmax.f32 %v1081_v18, 0.0  ;;  %1979 = vst [vmem:[#allocation2 + $0x30] sm:$0xff] %v1947_v13  ;;  %2296 = vrcp.f32 %v1432_v34  ;;  %v1587_v37 = vand.u32 2147483648, %v1432_v34  ;;  %v1585_v47 = vand.u32 2147483647, %v1432_v34 }
 0x422   :  { %v1564_v50 = vmul.f32 %v2291_v62, %v1563_v61  ;;  %vm1581_vm11 = vweird.f32 %v1432_v34 }
 0x423   :  { %v1162_v22 = vpack.c.bf16 %v1138_v59, %v1137_v31  ;;  %v1588_v38 = vor.u32 1.1754944e-38, %v1587_v37  ;;  %vm1586_vm13 = vcmp.eq.f32.partialorder %v1585_v47, 8.507059e+37 }
 0x424   :  { %v1565_v24 = vadd.f32 %v2291_v62, %v1564_v50 }
 0x425   :  { %1282 = vmatmul.bf16.gmra.mxu3 %v1162_v22 }
 0x426   :  { %v2295_v23 = vpop.eup %2294  ;;  %v1083_v28 = vpop.f32.mrf.mxu2  ;;  %v1569_v39 = vsel %vm1568_vm8, %v2291_v62, %v1565_v24 }
 0x427   :  { %v1433_v63 = vadd.f32 1.0, %v2295_v23  ;;  %v2297_v42 = vpop.eup %2296  ;;  %v1574_v58 = vsel %vm1571_vm9, %v1573_v26, %v1569_v39  ;;  %v1084_v56 = vadd.f32 %v2951_v43, %v1083_v28 }
 0x428   :  { %v1948_v46 = vsel %vm3049_vm7, %v2661_v25, %v1574_v58  ;;  %v1577_v33 = vmul.f32 %v2297_v42, %v1432_v34  ;;  %vm1582_vm10 = vweird.f32 %v2297_v42 }
 0x429   :  { %2298 = vrcp.f32 %v1433_v63  ;;  %1980 = vst [vmem:[#allocation2 + $0x38] sm:$0xff] %v1948_v46  ;;  %vm1583_vm12 = vmor %vm1581_vm11, %vm1582_vm10  ;;  %v1139_v6 = vmax.f32 %v1084_v56, 0.0  ;;  %v1602_v8 = vand.u32 2147483648, %v1433_v63  ;;  %v1600_v34 = vand.u32 2147483647, %v1433_v63 }
 0x42a   :  { %v1578_v27 = vsub.f32 1.0, %v1577_v33  ;;  %vm1596_vm15 = vweird.f32 %v1433_v63 }
 0x42b   :  { %v1603_v59 = vor.u32 1.1754944e-38, %v1602_v8  ;;  %vm1601_vm1 = vcmp.eq.f32.partialorder %v1600_v34, 8.507059e+37 }
 0x42c   :  { %v1579_v16 = vmul.f32 %v2297_v42, %v1578_v27 }
 0x42e   :  { %v1085_v57 = vpop.f32.mrf.mxu2  ;;  %v1580_v44 = vadd.f32 %v2297_v42, %v1579_v16 }
 0x42f   :  { %v2299_v60 = vpop.eup %2298  ;;  %v1086_v62 = vadd.f32 %v2951_v43, %v1085_v57 }
 0x430   :  { %v1592_v3 = vmul.f32 %v2299_v60, %v1433_v63  ;;  %v1584_v25 = vsel %vm1583_vm12, %v2297_v42, %v1580_v44  ;;  %vm1597_vm14 = vweird.f32 %v2299_v60 }
 0x431   :  { %v1140_v7 = vmax.f32 %v1086_v62, 0.0  ;;  %v1589_v45 = vsel %vm1586_vm13, %v1588_v38, %v1584_v25  ;;  %vm1598_vm0 = vmor %vm1596_vm15, %vm1597_vm14 }
 0x432   :  { %v1593_v15 = vsub.f32 1.0, %v1592_v3  ;;  %v1949_v18 = vsel %vm3049_vm7, %v2665_v29, %v1589_v45 }
 0x433   :  { %v1163_v13 = vpack.c.bf16 %v1140_v7, %v1139_v6  ;;  %1981 = vst [vmem:[#allocation2 + $0x40] sm:$0xff] %v1949_v18 }
 0x434   :  { %v1594_v61 = vmul.f32 %v2299_v60, %v1593_v15 }
 0x435   :  { %1287 = vmatmul.bf16.gmra.mxu3 %v1163_v13 }
 0x436   :  { %v1595_v31 = vadd.f32 %v2299_v60, %v1594_v61 }
 0x438   :  { %v1599_v21 = vsel %vm1598_vm0, %v2299_v60, %v1595_v31 }
 0x439   :  { %v1604_v50 = vsel %vm1601_vm1, %v1603_v59, %v1599_v21 }
 0x43a   :  { %v1950_v55 = vsel %vm3049_vm7, %v2676_v40, %v1604_v50 }
 0x43b   :  { %1982 = vst [vmem:[#allocation2 + $0x48] sm:$0xff] %v1950_v55  ;;  %v1273_v29 = vpop.f32.mrf.mxu3 }
 0x43c   :  { %v1274_v22 = vadd.f32 %v3036_v48, %v1273_v29 }
 0x43e   :  { %v2145_v24 = vmul.f32 -1.442695, %v1274_v22 }
 0x440   :  { %2300 = vpow2.f32 %v2145_v24 }
 0x443   :  { %v1275_v23 = vpop.f32.mrf.mxu3 }
 0x444   :  { %v1276_v26 = vadd.f32 %v3036_v48, %v1275_v23 }
 0x446   :  { %v2301_v28 = vpop.eup %2300  ;;  %v2146_v39 = vmul.f32 -1.442695, %v1276_v26 }
 0x447   :  { %v1434_v63 = vadd.f32 1.0, %v2301_v28 }
 0x448   :  { %2302 = vpow2.f32 %v2146_v39 }
 0x449   :  { %2304 = vrcp.f32 %v1434_v63  ;;  %v1617_v27 = vand.u32 2147483648, %v1434_v63  ;;  %v1615_v16 = vand.u32 2147483647, %v1434_v63  ;;  %vm1611_vm4 = vweird.f32 %v1434_v63 }
 0x44b   :  { %v1618_v57 = vor.u32 1.1754944e-38, %v1617_v27  ;;  %vm1616_vm6 = vcmp.eq.f32.partialorder %v1615_v16, 8.507059e+37 }
 0x44e   :  { %v2303_v42 = vpop.eup %2302 }
 0x44f   :  { %v2305_v58 = vpop.eup %2304  ;;  %v1435_v46 = vadd.f32 1.0, %v2303_v42 }
 0x450   :  { %v1607_v33 = vmul.f32 %v2305_v58, %v1434_v63  ;;  %vm1612_vm3 = vweird.f32 %v2305_v58 }
 0x451   :  { %2306 = vrcp.f32 %v1435_v46  ;;  %vm1613_vm5 = vmor %vm1611_vm4, %vm1612_vm3  ;;  %v1632_v25 = vand.u32 2147483648, %v1435_v46  ;;  %v1630_v7 = vand.u32 2147483647, %v1435_v46  ;;  %vm1626_vm9 = vweird.f32 %v1435_v46 }
 0x452   :  { %v1608_v40 = vsub.f32 1.0, %v1607_v33 }
 0x453   :  { %v1633_v18 = vor.u32 1.1754944e-38, %v1632_v25  ;;  %vm1631_vm11 = vcmp.eq.f32.partialorder %v1630_v7, 8.507059e+37 }
 0x454   :  { %v1609_v37 = vmul.f32 %v2305_v58, %v1608_v40 }
 0x456   :  { %v1610_v47 = vadd.f32 %v2305_v58, %v1609_v37  ;;  %v3136_v37 = vld [vmem:[%s3244_s7] ss:$0 sm:$0xff] }
 0x457   :  { %v2307_v56 = vpop.eup %2306 }
 0x458   :  { %v1614_v60 = vsel %vm1613_vm5, %v2305_v58, %v1610_v47  ;;  %v1622_v44 = vmul.f32 %v2307_v56, %v1435_v46  ;;  %vm1627_vm8 = vweird.f32 %v2307_v56 }
 0x459   :  { %v1619_v62 = vsel %vm1616_vm6, %v1618_v57, %v1614_v60  ;;  %vm1628_vm10 = vmor %vm1626_vm9, %vm1627_vm8 }
 0x45a   :  { %v1951_v38 = vsel %vm3049_vm7, %v2685_v51, %v1619_v62  ;;  %v1623_v3 = vsub.f32 1.0, %v1622_v44 }
 0x45b   :  { %1983 = vst [vmem:[#allocation2 + $0x50] sm:$0xff] %v1951_v38 }
 0x45c   :  { %v1624_v6 = vmul.f32 %v2307_v56, %v1623_v3 }
 0x45e   :  { %v974_v45 = vpop.permute.xlu2 %973  ;;  %v1625_v15 = vadd.f32 %v2307_v56, %v1624_v6 }
 0x45f   :  { %2099 = vmatmul.msk.bf16.gmra.mxu2 %vm981_vm2, %v974_v45 }
 0x460   :  { %v1629_v8 = vsel %vm1628_vm10, %v2307_v56, %v1625_v15 }
 0x461   :  { %v1634_v13 = vsel %vm1631_vm11, %v1633_v18, %v1629_v8 }
 0x462   :  { %v1952_v51 = vsel %vm3049_vm7, %v2702_v0, %v1634_v13 }
 0x463   :  { %1984 = vst [vmem:[#allocation2 + $0x58] sm:$0xff] %v1952_v51 }
 0x464   :  { %v845_v22 = vpop.permute.xlu0 %844 }
 0x465   :  { %v910_v26 = vadd.f32 %v845_v22, %v2990_v10 }
 0x46b   :  { %v1088_v61 = vpop.f32.mrf.mxu2 }
 0x46c   :  { %v1089_v31 = vadd.f32 %v2951_v43, %v1088_v61 }
 0x46e   :  { %v976_v34 = vpop.permute.xlu2 %975  ;;  %v1141_v50 = vmax.f32 %v1089_v31, 0.0 }
 0x46f   :  { %2100 = vmatmul.msk.bf16.gmra.mxu2 %vm981_vm2, %v976_v34 }
 0x473   :  { %v1090_v59 = vpop.f32.mrf.mxu2 }
 0x474   :  { %v1091_v21 = vadd.f32 %v2951_v43, %v1090_v59 }
 0x476   :  { %v1142_v55 = vmax.f32 %v1091_v21, 0.0 }
 0x478   :  { %v1164_v29 = vpack.c.bf16 %v1142_v55, %v1141_v50 }
 0x47a   :  { %1292 = vmatmul.bf16.gmra.mxu3 %v1164_v29 }
 0x47b   :  { %v1093_v24 = vpop.f32.mrf.mxu2 }
 0x47c   :  { %v847_v23 = vpop.permute.xlu1 %846  ;;  %v1094_v39 = vadd.f32 %v2951_v43, %v1093_v24 }
 0x47d   :  { %v911_v0 = vadd.f32 %v847_v23, %v3006_v53 }
 0x47e   :  { %v1143_v58 = vmax.f32 %v1094_v39, 0.0 }
 0x47f   :  { %v927_v28 = vpack.c.bf16 %v911_v0, %v910_v26 }
 0x481   :  { %979 = vrot.lane.b32.xlu1 %v927_v28, %s2418_s25 }
 0x483   :  { %v1095_v63 = vpop.f32.mrf.mxu2 }
 0x484   :  { %v1096_v42 = vadd.f32 %v2951_v43, %v1095_v63 }
 0x486   :  { %v1144_v46 = vmax.f32 %v1096_v42, 0.0 }
 0x488   :  { %v1165_v33 = vpack.c.bf16 %v1144_v46, %v1143_v58 }
 0x48a   :  { %1297 = vmatmul.bf16.gmra.mxu3 %v1165_v33 }
 0x48b   :  { %v1098_v40 = vpop.f32.mrf.mxu2 }
 0x48c   :  { %v1099_v16 = vadd.f32 %v3136_v37, %v1098_v40 }
 0x48e   :  { %v978_v27 = vpop.permute.xlu0 %977  ;;  %v1145_v57 = vmax.f32 %v1099_v16, 0.0 }
 0x48f   :  { %2101 = vmatmul.msk.bf16.gmra.mxu2 %vm981_vm2, %v978_v27 }
 0x493   :  { %v1100_v47 = vpop.f32.mrf.mxu2 }
 0x494   :  { %v1101_v56 = vadd.f32 %v3136_v37, %v1100_v47 }
 0x496   :  { %v1146_v43 = vmax.f32 %v1101_v56, 0.0 }
 0x498   :  { %v1278_v60 = vpop.f32.mrf.mxu3  ;;  %v1166_v44 = vpack.c.bf16 %v1146_v43, %v1145_v57 }
 0x499   :  { %v1279_v62 = vadd.f32 %v3036_v48, %v1278_v60 }
 0x49a   :  { %1302 = vmatmul.bf16.gmra.mxu3 %v1166_v44 }
 0x49b   :  { %v2147_v38 = vmul.f32 -1.442695, %v1279_v62 }
 0x49d   :  { %2308 = vpow2.f32 %v2147_v38 }
 0x4a0   :  { %v1280_v3 = vpop.f32.mrf.mxu3 }
 0x4a1   :  { %v1281_v25 = vadd.f32 %v3036_v48, %v1280_v3 }
 0x4a3   :  { %v2309_v6 = vpop.eup %2308  ;;  %v2148_v7 = vmul.f32 -1.442695, %v1281_v25 }
 0x4a4   :  { %v1436_v45 = vadd.f32 1.0, %v2309_v6 }
 0x4a5   :  { %2310 = vpow2.f32 %v2148_v7 }
 0x4a6   :  { %2312 = vrcp.f32 %v1436_v45  ;;  %v1647_v59 = vand.u32 2147483648, %v1436_v45  ;;  %v1645_v55 = vand.u32 2147483647, %v1436_v45  ;;  %vm1641_vm13 = vweird.f32 %v1436_v45 }
 0x4a8   :  { %v1283_v15 = vpop.f32.mrf.mxu3  ;;  %v1648_v0 = vor.u32 1.1754944e-38, %v1647_v59  ;;  %vm1646_vm15 = vcmp.eq.f32.partialorder %v1645_v55, 8.507059e+37 }
 0x4a9   :  { %v1284_v18 = vadd.f32 %v3036_v48, %v1283_v15 }
 0x4ab   :  { %v2311_v8 = vpop.eup %2310  ;;  %v2149_v13 = vmul.f32 -1.442695, %v1284_v18 }
 0x4ac   :  { %v2313_v51 = vpop.eup %2312  ;;  %v1437_v61 = vadd.f32 1.0, %v2311_v8 }
 0x4ad   :  { %v1637_v34 = vmul.f32 %v2313_v51, %v1436_v45  ;;  %2314 = vpow2.f32 %v2149_v13  ;;  %vm1642_vm12 = vweird.f32 %v2313_v51 }
 0x4ae   :  { %2316 = vrcp.f32 %v1437_v61  ;;  %vm1643_vm14 = vmor %vm1641_vm13, %vm1642_vm12  ;;  %v1662_v33 = vand.u32 2147483648, %v1437_v61  ;;  %v1660_v16 = vand.u32 2147483647, %v1437_v61  ;;  %vm1656_vm1 = vweird.f32 %v1437_v61 }
 0x4af   :  { %v1638_v31 = vsub.f32 1.0, %v1637_v34 }
 0x4b0   :  { %v1285_v21 = vpop.f32.mrf.mxu3  ;;  %v1663_v44 = vor.u32 1.1754944e-38, %v1662_v33  ;;  %vm1661_vm4 = vcmp.eq.f32.partialorder %v1660_v16, 8.507059e+37 }
 0x4b1   :  { %v1639_v50 = vmul.f32 %v2313_v51, %v1638_v31  ;;  %v1286_v29 = vadd.f32 %v3036_v48, %v1285_v21 }
 0x4b3   :  { %v2315_v22 = vpop.eup %2314  ;;  %v1640_v24 = vadd.f32 %v2313_v51, %v1639_v50  ;;  %v2150_v23 = vmul.f32 -1.442695, %v1286_v29 }
 0x4b4   :  { %v2317_v26 = vpop.eup %2316  ;;  %v1438_v28 = vadd.f32 1.0, %v2315_v22 }
 0x4b5   :  { %v1644_v39 = vsel %vm1643_vm14, %v2313_v51, %v1640_v24  ;;  %v1652_v63 = vmul.f32 %v2317_v26, %v1437_v61  ;;  %2318 = vpow2.f32 %v2150_v23  ;;  %vm1657_vm0 = vweird.f32 %v2317_v26 }
 0x4b6   :  { %v1649_v42 = vsel %vm1646_vm15, %v1648_v0, %v1644_v39  ;;  %2320 = vrcp.f32 %v1438_v28  ;;  %vm1658_vm3 = vmor %vm1656_vm1, %vm1657_vm0  ;;  %v1677_v7 = vand.u32 2147483648, %v1438_v28  ;;  %v1675_v18 = vand.u32 2147483647, %v1438_v28 }
 0x4b7   :  { %v1953_v58 = vsel %vm3049_vm7, %v2749_v2, %v1649_v42  ;;  %v1653_v46 = vsub.f32 1.0, %v1652_v63  ;;  %vm1671_vm6 = vweird.f32 %v1438_v28 }
 0x4b8   :  { %1985 = vst [vmem:[#allocation2 + $0x60] sm:$0xff] %v1953_v58  ;;  %v1288_v40 = vpop.f32.mrf.mxu3  ;;  %v1678_v31 = vor.u32 1.1754944e-38, %v1677_v7  ;;  %vm1676_vm9 = vcmp.eq.f32.partialorder %v1675_v18, 8.507059e+37 }
 0x4b9   :  { %v1654_v27 = vmul.f32 %v2317_v26, %v1653_v46  ;;  %v1289_v47 = vadd.f32 %v3036_v48, %v1288_v40 }
 0x4bb   :  { %v2319_v56 = vpop.eup %2318  ;;  %v1655_v57 = vadd.f32 %v2317_v26, %v1654_v27  ;;  %v2151_v43 = vmul.f32 -1.442695, %v1289_v47 }
 0x4bc   :  { %v2321_v60 = vpop.eup %2320  ;;  %v1439_v62 = vadd.f32 1.0, %v2319_v56 }
 0x4bd   :  { %v1659_v38 = vsel %vm1658_vm3, %v2317_v26, %v1655_v57  ;;  %v1667_v2 = vmul.f32 %v2321_v60, %v1438_v28  ;;  %2322 = vpow2.f32 %v2151_v43  ;;  %vm1672_vm5 = vweird.f32 %v2321_v60 }
 0x4be   :  { %v1664_v3 = vsel %vm1661_vm4, %v1663_v44, %v1659_v38  ;;  %2324 = vrcp.f32 %v1439_v62  ;;  %vm1673_vm8 = vmor %vm1671_vm6, %vm1672_vm5  ;;  %v1690_v24 = vand.u32 2147483647, %v1439_v62  ;;  %vm1686_vm11 = vweird.f32 %v1439_v62 }
 0x4bf   :  { %v1954_v25 = vsel %vm3049_vm7, %v2717_v14, %v1664_v3  ;;  %v1668_v6 = vsub.f32 1.0, %v1667_v2 }
 0x4c0   :  { %1986 = vst [vmem:[#allocation2 + $0x68] sm:$0xff] %v1954_v25  ;;  %v1290_v45 = vpop.f32.mrf.mxu3  ;;  %vm1691_vm13 = vcmp.eq.f32.partialorder %v1690_v24, 8.507059e+37 }
 0x4c1   :  { %v1669_v15 = vmul.f32 %v2321_v60, %v1668_v6  ;;  %v1291_v8 = vadd.f32 %v3036_v48, %v1290_v45  ;;  %v1692_v48 = vand.u32 2147483648, %v1439_v62 }
 0x4c3   :  { %v2323_v13 = vpop.eup %2322  ;;  %v1670_v51 = vadd.f32 %v2321_v60, %v1669_v15  ;;  %v2152_v61 = vmul.f32 -1.442695, %v1291_v8  ;;  %v1693_v28 = vor.u32 1.1754944e-38, %v1692_v48 }
 0x4c4   :  { %v2325_v34 = vpop.eup %2324  ;;  %v1440_v59 = vadd.f32 1.0, %v2323_v13 }
 0x4c5   :  { %v1674_v21 = vsel %vm1673_vm8, %v2321_v60, %v1670_v51  ;;  %v1682_v14 = vmul.f32 %v2325_v34, %v1439_v62  ;;  %2326 = vpow2.f32 %v2152_v61  ;;  %vm1687_vm10 = vweird.f32 %v2325_v34 }
 0x4c6   :  { %v1679_v50 = vsel %vm1676_vm9, %v1678_v31, %v1674_v21  ;;  %2328 = vrcp.f32 %v1440_v59  ;;  %vm1688_vm12 = vmor %vm1686_vm11, %vm1687_vm10  ;;  %v1707_v33 = vand.u32 2147483648, %v1440_v59  ;;  %v1705_v27 = vand.u32 2147483647, %v1440_v59 }
 0x4c7   :  { %v1955_v55 = vsel %vm3049_vm7, %v2756_v5, %v1679_v50  ;;  %v1683_v29 = vsub.f32 1.0, %v1682_v14  ;;  %vm1701_vm15 = vweird.f32 %v1440_v59 }
 0x4c8   :  { %1987 = vst [vmem:[#allocation2 + $0x70] sm:$0xff] %v1955_v55  ;;  %v1708_v56 = vor.u32 1.1754944e-38, %v1707_v33  ;;  %vm1706_vm1 = vcmp.eq.f32.partialorder %v1705_v27, 8.507059e+37 }
 0x4c9   :  { %v1684_v22 = vmul.f32 %v2325_v34, %v1683_v29  ;;  %v3172_v29 = vld [vmem:[%s3246_s9] ss:$0 sm:$0xff]  ;;  %s2419_s9 = smov [#allocation2]  }
 0x4ca   :  { %s2009_s15 = sshll.u32 %s2419_s9, 4  ;;  %s2010_s15 = int_to_ptr.vmem [resolvable:$true] %s2009_s15 }
 0x4cb   :  { %v2327_v23 = vpop.eup %2326  ;;  %v1685_v26 = vadd.f32 %v2325_v34, %v1684_v22 }
 0x4cc   :  { %v2329_v0 = vpop.eup %2328  ;;  %v1441_v39 = vadd.f32 1.0, %v2327_v23 }
 0x4cd   :  { %v1689_v63 = vsel %vm1688_vm12, %v2325_v34, %v1685_v26  ;;  %v1697_v42 = vmul.f32 %v2329_v0, %v1440_v59  ;;  %vm1702_vm14 = vweird.f32 %v2329_v0 }
 0x4ce   :  { %v1694_v58 = vsel %vm1691_vm13, %v1693_v28, %v1689_v63  ;;  %2330 = vrcp.f32 %v1441_v39  ;;  %vm1703_vm0 = vmor %vm1701_vm15, %vm1702_vm14  ;;  %v1722_v62 = vand.u32 2147483648, %v1441_v39  ;;  %v1720_v2 = vand.u32 2147483647, %v1441_v39 }
 0x4cf   :  { %v1956_v5 = vsel %vm3049_vm7, %v2764_v17, %v1694_v58  ;;  %v1698_v46 = vsub.f32 1.0, %v1697_v42  ;;  %vm1716_vm4 = vweird.f32 %v1441_v39 }
 0x4d0   :  { %1988 = vst [vmem:[#allocation2 + $0x78] sm:$0xff] %v1956_v5  ;;  %v1723_v25 = vor.u32 1.1754944e-38, %v1722_v62  ;;  %vm1721_vm6 = vcmp.eq.f32.partialorder %v1720_v2, 8.507059e+37 }
 0x4d1   :  { %v1699_v40 = vmul.f32 %v2329_v0, %v1698_v46 }
 0x4d3   :  { %v1700_v16 = vadd.f32 %v2329_v0, %v1699_v40 }
 0x4d4   :  { %v2331_v47 = vpop.eup %2330 }
 0x4d5   :  { %v1704_v57 = vsel %vm1703_vm0, %v2329_v0, %v1700_v16  ;;  %v1712_v43 = vmul.f32 %v2331_v47, %v1441_v39  ;;  %vm1717_vm3 = vweird.f32 %v2331_v47 }
 0x4d6   :  { %v1709_v60 = vsel %vm1706_vm1, %v1708_v56, %v1704_v57  ;;  %vm1718_vm5 = vmor %vm1716_vm4, %vm1717_vm3 }
 0x4d7   :  { %v1957_v44 = vsel %vm3049_vm7, %v2781_v36, %v1709_v60  ;;  %v1713_v17 = vsub.f32 1.0, %v1712_v43 }
 0x4d8   :  { %1989 = vst [vmem:[#allocation2 + $0x80] sm:$0xff] %v1957_v44 }
 0x4d9   :  { %v1714_v38 = vmul.f32 %v2331_v47, %v1713_v17 }
 0x4db   :  { %v1715_v3 = vadd.f32 %v2331_v47, %v1714_v38 }
 0x4dd   :  { %v1719_v6 = vsel %vm1718_vm5, %v2331_v47, %v1715_v3 }
 0x4de   :  { %v1724_v7 = vsel %vm1721_vm6, %v1723_v25, %v1719_v6 }
 0x4df   :  { %v1958_v45 = vsel %vm3049_vm7, %v2787_v41, %v1724_v7 }
 0x4e0   :  { %1990 = vst [vmem:[#allocation2 + $0x88] sm:$0xff] %v1958_v45 }
 0x4e2   :  { %v1103_v15 = vpop.f32.mrf.mxu2 }
 0x4e3   :  { %v1104_v36 = vadd.f32 %v3136_v37, %v1103_v15 }
 0x4e5   :  { %v1147_v13 = vmax.f32 %v1104_v36, 0.0 }
 0x4ea   :  { %v1105_v18 = vpop.f32.mrf.mxu2 }
 0x4eb   :  { %v1106_v8 = vadd.f32 %v3136_v37, %v1105_v18 }
 0x4ed   :  { %v1148_v51 = vmax.f32 %v1106_v8, 0.0 }
 0x4ef   :  { %v1167_v61 = vpack.c.bf16 %v1148_v51, %v1147_v13 }
 0x4f1   :  { %1307 = vmatmul.bf16.gmra.mxu3 %v1167_v61 }
 0x4f2   :  { %v1108_v34 = vpop.f32.mrf.mxu2 }
 0x4f3   :  { %v980_v31 = vpop.permute.xlu1 %979  ;;  %v1109_v59 = vadd.f32 %v3136_v37, %v1108_v34 }
 0x4f4   :  { %2102 = vmatmul.msk.bf16.gmra.mxu2 %vm981_vm2, %v980_v31 }
 0x4f5   :  { %v1149_v50 = vmax.f32 %v1109_v59, 0.0 }
 0x4fa   :  { %v1110_v21 = vpop.f32.mrf.mxu2 }
 0x4fb   :  { %v1111_v41 = vadd.f32 %v3136_v37, %v1110_v21 }
 0x4fd   :  { %v1293_v14 = vpop.f32.mrf.mxu3  ;;  %v1150_v55 = vmax.f32 %v1111_v41, 0.0 }
 0x4fe   :  { %v1294_v48 = vadd.f32 %v3172_v29, %v1293_v14 }
 0x4ff   :  { %v1168_v22 = vpack.c.bf16 %v1150_v55, %v1149_v50 }
 0x500   :  { %v2153_v24 = vmul.f32 -1.442695, %v1294_v48 }
 0x501   :  { %1312 = vmatmul.bf16.gmra.mxu3 %v1168_v22 }
 0x502   :  { %2332 = vpow2.f32 %v2153_v24 }
 0x505   :  { %v1295_v23 = vpop.f32.mrf.mxu3 }
 0x506   :  { %v1296_v26 = vadd.f32 %v3172_v29, %v1295_v23 }
 0x508   :  { %v2333_v0 = vpop.eup %2332  ;;  %v2154_v28 = vmul.f32 -1.442695, %v1296_v26 }
 0x509   :  { %v1442_v39 = vadd.f32 1.0, %v2333_v0 }
 0x50a   :  { %2334 = vpow2.f32 %v2154_v28 }
 0x50b   :  { %2336 = vrcp.f32 %v1442_v39  ;;  %v1737_v47 = vand.u32 2147483648, %v1442_v39  ;;  %v1735_v43 = vand.u32 2147483647, %v1442_v39  ;;  %vm1731_vm8 = vweird.f32 %v1442_v39 }
 0x50d   :  { %v1298_v63 = vpop.f32.mrf.mxu3  ;;  %v1738_v2 = vor.u32 1.1754944e-38, %v1737_v47  ;;  %vm1736_vm10 = vcmp.eq.f32.partialorder %v1735_v43, 8.507059e+37 }
 0x50e   :  { %v1299_v42 = vadd.f32 %v3172_v29, %v1298_v63 }
 0x510   :  { %v2335_v58 = vpop.eup %2334  ;;  %v2155_v5 = vmul.f32 -1.442695, %v1299_v42 }
 0x511   :  { %v2337_v46 = vpop.eup %2336  ;;  %v1443_v33 = vadd.f32 1.0, %v2335_v58 }
 0x512   :  { %v1727_v40 = vmul.f32 %v2337_v46, %v1442_v39  ;;  %2338 = vpow2.f32 %v2155_v5  ;;  %v1113_v27 = vpop.f32.mrf.mxu2  ;;  %vm1732_vm2 = vweird.f32 %v2337_v46 }
 0x513   :  { %2340 = vrcp.f32 %v1443_v33  ;;  %vm1733_vm9 = vmor %vm1731_vm8, %vm1732_vm2  ;;  %v1114_v25 = vadd.f32 %v3136_v37, %v1113_v27  ;;  %v1750_v13 = vand.u32 2147483647, %v1443_v33  ;;  %v1752_v51 = vand.u32 2147483648, %v1443_v33 }
 0x514   :  { %v1728_v16 = vsub.f32 1.0, %v1727_v40  ;;  %vm1746_vm12 = vweird.f32 %v1443_v33 }
 0x515   :  { %v1300_v56 = vpop.f32.mrf.mxu3  ;;  %v1151_v61 = vmax.f32 %v1114_v25, 0.0  ;;  %vm1751_vm14 = vcmp.eq.f32.partialorder %v1750_v13, 8.507059e+37 }
 0x516   :  { %v1729_v57 = vmul.f32 %v2337_v46, %v1728_v16  ;;  %v1301_v60 = vadd.f32 %v3172_v29, %v1300_v56 }
 0x518   :  { %v2339_v44 = vpop.eup %2338  ;;  %v1730_v17 = vadd.f32 %v2337_v46, %v1729_v57  ;;  %v2156_v62 = vmul.f32 -1.442695, %v1301_v60 }
 0x519   :  { %v2341_v38 = vpop.eup %2340  ;;  %v1444_v3 = vadd.f32 1.0, %v2339_v44 }
 0x51a   :  { %v1734_v6 = vsel %vm1733_vm9, %v2337_v46, %v1730_v17  ;;  %v1742_v7 = vmul.f32 %v2341_v38, %v1443_v33  ;;  %2342 = vpow2.f32 %v2156_v62  ;;  %v1115_v15 = vpop.f32.mrf.mxu2  ;;  %vm1747_vm11 = vweird.f32 %v2341_v38 }
 0x51b   :  { %v1739_v45 = vsel %vm1736_vm10, %v1738_v2, %v1734_v6  ;;  %2344 = vrcp.f32 %v1444_v3  ;;  %v1116_v8 = vadd.f32 %v3136_v37, %v1115_v15  ;;  %vm1748_vm13 = vmor %vm1746_vm12, %vm1747_vm11  ;;  %v1767_v39 = vand.u32 2147483648, %v1444_v3 }
 0x51c   :  { %v1959_v36 = vsel %vm3049_vm7, %v2823_v49, %v1739_v45  ;;  %v1743_v18 = vsub.f32 1.0, %v1742_v7  ;;  %v1753_v49 = vor.u32 1.1754944e-38, %v1752_v51  ;;  %v1765_v58 = vand.u32 2147483647, %v1444_v3 }
 0x51d   :  { %1991 = vst [vmem:[#allocation2 + $0x90] sm:$0xff] %v1959_v36  ;;  %v1303_v34 = vpop.f32.mrf.mxu3  ;;  %v1152_v59 = vmax.f32 %v1116_v8, 0.0  ;;  %vm1761_vm0 = vweird.f32 %v1444_v3  ;;  %v1768_v16 = vor.u32 1.1754944e-38, %v1767_v39 }
 0x51e   :  { %v1744_v31 = vmul.f32 %v2341_v38, %v1743_v18  ;;  %v1304_v21 = vadd.f32 %v3172_v29, %v1303_v34  ;;  %vm1766_vm3 = vcmp.eq.f32.partialorder %v1765_v58, 8.507059e+37 }
 0x51f   :  { %v1169_v50 = vpack.c.bf16 %v1152_v59, %v1151_v61 }
 0x520   :  { %v2343_v41 = vpop.eup %2342  ;;  %v1745_v14 = vadd.f32 %v2341_v38, %v1744_v31  ;;  %v2157_v55 = vmul.f32 -1.442695, %v1304_v21 }
 0x521   :  { %v2345_v48 = vpop.eup %2344  ;;  %v1445_v22 = vadd.f32 1.0, %v2343_v41  ;;  %1317 = vmatmul.bf16.gmra.mxu3 %v1169_v50 }
 0x522   :  { %v1749_v24 = vsel %vm1748_vm13, %v2341_v38, %v1745_v14  ;;  %v1757_v23 = vmul.f32 %v2345_v48, %v1444_v3  ;;  %2346 = vpow2.f32 %v2157_v55  ;;  %vm1762_vm15 = vweird.f32 %v2345_v48 }
 0x523   :  { %v1754_v26 = vsel %vm1751_vm14, %v1753_v49, %v1749_v24  ;;  %2348 = vrcp.f32 %v1445_v22  ;;  %vm1763_vm1 = vmor %vm1761_vm0, %vm1762_vm15  ;;  %v1782_v44 = vand.u32 2147483648, %v1445_v22  ;;  %v1780_v62 = vand.u32 2147483647, %v1445_v22 }
 0x524   :  { %v1960_v0 = vsel %vm3049_vm7, %v2839_v11, %v1754_v26  ;;  %v1758_v28 = vsub.f32 1.0, %v1757_v23  ;;  %vm1776_vm5 = vweird.f32 %v1445_v22 }
 0x525   :  { %1992 = vst [vmem:[#allocation2 + $0x98] sm:$0xff] %v1960_v0  ;;  %v1305_v63 = vpop.f32.mrf.mxu3  ;;  %v1783_v25 = vor.u32 1.1754944e-38, %v1782_v44  ;;  %vm1781_vm2 = vcmp.eq.f32.partialorder %v1780_v62, 8.507059e+37 }
 0x526   :  { %v1759_v42 = vmul.f32 %v2345_v48, %v1758_v28  ;;  %v1306_v5 = vadd.f32 %v3172_v29, %v1305_v63 }
 0x528   :  { %v2347_v46 = vpop.eup %2346  ;;  %v1760_v33 = vadd.f32 %v2345_v48, %v1759_v42  ;;  %v2158_v40 = vmul.f32 -1.442695, %v1306_v5 }
 0x529   :  { %v2349_v27 = vpop.eup %2348  ;;  %v1446_v47 = vadd.f32 1.0, %v2347_v46 }
 0x52a   :  { %v1764_v56 = vsel %vm1763_vm1, %v2345_v48, %v1760_v33  ;;  %v1772_v11 = vmul.f32 %v2349_v27, %v1445_v22  ;;  %2350 = vpow2.f32 %v2158_v40  ;;  %vm1777_vm4 = vweird.f32 %v2349_v27 }
 0x52b   :  { %v1769_v57 = vsel %vm1766_vm3, %v1768_v16, %v1764_v56  ;;  %2352 = vrcp.f32 %v1446_v47  ;;  %vm1778_vm6 = vmor %vm1776_vm5, %vm1777_vm4  ;;  %v1797_v18 = vand.u32 2147483648, %v1446_v47  ;;  %v1795_v13 = vand.u32 2147483647, %v1446_v47 }
 0x52c   :  { %v1961_v43 = vsel %vm3049_vm7, %v2851_v20, %v1769_v57  ;;  %v1773_v60 = vsub.f32 1.0, %v1772_v11  ;;  %vm1791_vm9 = vweird.f32 %v1446_v47 }
 0x52d   :  { %1993 = vst [vmem:[#allocation2 + $0xa0] sm:$0xff] %v1961_v43  ;;  %v1798_v34 = vor.u32 1.1754944e-38, %v1797_v18  ;;  %vm1796_vm11 = vcmp.eq.f32.partialorder %v1795_v13, 8.507059e+37 }
 0x52e   :  { %v1774_v17 = vmul.f32 %v2349_v27, %v1773_v60 }
 0x530   :  { %v2351_v38 = vpop.eup %2350  ;;  %v1775_v2 = vadd.f32 %v2349_v27, %v1774_v17 }
 0x531   :  { %v2353_v3 = vpop.eup %2352  ;;  %v1447_v6 = vadd.f32 1.0, %v2351_v38 }
 0x532   :  { %v1779_v7 = vsel %vm1778_vm6, %v2349_v27, %v1775_v2  ;;  %v1787_v45 = vmul.f32 %v2353_v3, %v1446_v47  ;;  %vm1792_vm8 = vweird.f32 %v2353_v3 }
 0x533   :  { %v1784_v15 = vsel %vm1781_vm2, %v1783_v25, %v1779_v7  ;;  %2354 = vrcp.f32 %v1447_v6  ;;  %vm1793_vm10 = vmor %vm1791_vm9, %vm1792_vm8  ;;  %v1812_v14 = vand.u32 2147483648, %v1447_v6  ;;  %v1810_v55 = vand.u32 2147483647, %v1447_v6 }
 0x534   :  { %v1962_v20 = vsel %vm3049_vm7, %v2830_v1, %v1784_v15  ;;  %v1788_v36 = vsub.f32 1.0, %v1787_v45  ;;  %vm1806_vm13 = vweird.f32 %v1447_v6 }
 0x535   :  { %1994 = vst [vmem:[#allocation2 + $0xa8] sm:$0xff] %v1962_v20  ;;  %v1813_v49 = vor.u32 1.1754944e-38, %v1812_v14  ;;  %vm1811_vm15 = vcmp.eq.f32.partialorder %v1810_v55, 8.507059e+37 }
 0x536   :  { %v1789_v8 = vmul.f32 %v2353_v3, %v1788_v36 }
 0x538   :  { %v1790_v51 = vadd.f32 %v2353_v3, %v1789_v8 }
 0x539   :  { %v2355_v61 = vpop.eup %2354 }
 0x53a   :  { %v1794_v31 = vsel %vm1793_vm10, %v2353_v3, %v1790_v51  ;;  %v1802_v59 = vmul.f32 %v2355_v61, %v1447_v6  ;;  %vm1807_vm12 = vweird.f32 %v2355_v61 }
 0x53b   :  { %v1799_v21 = vsel %vm1796_vm11, %v1798_v34, %v1794_v31  ;;  %vm1808_vm14 = vmor %vm1806_vm13, %vm1807_vm12 }
 0x53c   :  { %v1963_v41 = vsel %vm3049_vm7, %v2865_v52, %v1799_v21  ;;  %v1803_v1 = vsub.f32 1.0, %v1802_v59 }
 0x53d   :  { %1995 = vst [vmem:[#allocation2 + $0xb0] sm:$0xff] %v1963_v41 }
 0x53e   :  { %v1804_v50 = vmul.f32 %v2355_v61, %v1803_v1 }
 0x540   :  { %v1805_v48 = vadd.f32 %v2355_v61, %v1804_v50 }
 0x542   :  { %v1809_v22 = vsel %vm1808_vm14, %v2355_v61, %v1805_v48 }
 0x543   :  { %v1814_v24 = vsel %vm1811_vm15, %v1813_v49, %v1809_v22 }
 0x544   :  { %v1964_v23 = vsel %vm3049_vm7, %v2868_v54, %v1814_v24 }
 0x545   :  { %1996 = vst [vmem:[#allocation2 + $0xb8] sm:$0xff] %v1964_v23 }
 0x574   :  { %v1308_v26 = vpop.f32.mrf.mxu3 }
 0x575   :  { %v1309_v52 = vadd.f32 %v3172_v29, %v1308_v26 }
 0x577   :  { %v2159_v0 = vmul.f32 -1.442695, %v1309_v52  ;;  %v1118_v28 = vpop.f32.mrf.mxu2 }
 0x578   :  { %v1119_v58 = vadd.f32 %v3136_v37, %v1118_v28 }
 0x579   :  { %2356 = vpow2.f32 %v2159_v0 }
 0x57a   :  { %v1153_v54 = vmax.f32 %v1119_v58, 0.0 }
 0x57c   :  { %v1310_v39 = vpop.f32.mrf.mxu3 }
 0x57d   :  { %v1311_v63 = vadd.f32 %v3172_v29, %v1310_v39 }
 0x57f   :  { %v2357_v42 = vpop.eup %2356  ;;  %v2160_v5 = vmul.f32 -1.442695, %v1311_v63  ;;  %v1120_v46 = vpop.f32.mrf.mxu2 }
 0x580   :  { %v1448_v33 = vadd.f32 1.0, %v2357_v42  ;;  %v1121_v40 = vadd.f32 %v3136_v37, %v1120_v46 }
 0x581   :  { %2358 = vpow2.f32 %v2160_v5 }
 0x582   :  { %2360 = vrcp.f32 %v1448_v33  ;;  %v1154_v27 = vmax.f32 %v1121_v40, 0.0  ;;  %v1827_v62 = vand.u32 2147483648, %v1448_v33  ;;  %v1825_v37 = vand.u32 2147483647, %v1448_v33 }
 0x583   :  { %vm1821_vm1 = vweird.f32 %v1448_v33 }
 0x584   :  { %v1170_v16 = vpack.c.bf16 %v1154_v27, %v1153_v54  ;;  %v1313_v47 = vpop.f32.mrf.mxu3  ;;  %v1828_v7 = vor.u32 1.1754944e-38, %v1827_v62  ;;  %vm1826_vm4 = vcmp.eq.f32.partialorder %v1825_v37, 8.507059e+37 }
 0x585   :  { %v1314_v56 = vadd.f32 %v3172_v29, %v1313_v47 }
 0x586   :  { %1322 = vmatmul.bf16.gmra.mxu3 %v1170_v16 }
 0x587   :  { %v2359_v11 = vpop.eup %2358  ;;  %v2161_v60 = vmul.f32 -1.442695, %v1314_v56 }
 0x588   :  { %v2361_v57 = vpop.eup %2360  ;;  %v1449_v43 = vadd.f32 1.0, %v2359_v11 }
 0x589   :  { %v1817_v44 = vmul.f32 %v2361_v57, %v1448_v33  ;;  %vm1822_vm0 = vweird.f32 %v2361_v57 }
 0x58a   :  { %2362 = vrcp.f32 %v1449_v43  ;;  %vm1823_vm3 = vmor %vm1821_vm1, %vm1822_vm0  ;;  %v1842_v61 = vand.u32 2147483648, %v1449_v43  ;;  %v1840_v31 = vand.u32 2147483647, %v1449_v43  ;;  %vm1836_vm6 = vweird.f32 %v1449_v43 }
 0x58b   :  { %v1818_v17 = vsub.f32 1.0, %v1817_v44  ;;  %2364 = vpow2.f32 %v2161_v60 }
 0x58c   :  { %v1315_v2 = vpop.f32.mrf.mxu3  ;;  %v1843_v41 = vor.u32 1.1754944e-38, %v1842_v61  ;;  %vm1841_vm8 = vcmp.eq.f32.partialorder %v1840_v31, 8.507059e+37 }
 0x58d   :  { %v1819_v38 = vmul.f32 %v2361_v57, %v1818_v17  ;;  %v1316_v3 = vadd.f32 %v3172_v29, %v1315_v2 }
 0x58f   :  { %v1820_v25 = vadd.f32 %v2361_v57, %v1819_v38  ;;  %v2162_v45 = vmul.f32 -1.442695, %v1316_v3 }
 0x590   :  { %v2363_v6 = vpop.eup %2362 }
 0x591   :  { %v2365_v15 = vpop.eup %2364  ;;  %v1824_v20 = vsel %vm1823_vm3, %v2361_v57, %v1820_v25  ;;  %v1832_v36 = vmul.f32 %v2363_v6, %v1449_v43  ;;  %2366 = vpow2.f32 %v2162_v45  ;;  %vm1837_vm5 = vweird.f32 %v2363_v6 }
 0x592   :  { %v1829_v18 = vsel %vm1826_vm4, %v1828_v7, %v1824_v20  ;;  %v1450_v8 = vadd.f32 1.0, %v2365_v15  ;;  %vm1838_vm2 = vmor %vm1836_vm6, %vm1837_vm5 }
 0x593   :  { %v1965_v13 = vsel %vm3049_vm7, %v2925_v4, %v1829_v18  ;;  %v1833_v51 = vsub.f32 1.0, %v1832_v36 }
 0x594   :  { %1997 = vst [vmem:[#allocation2 + $0xc0] sm:$0xff] %v1965_v13  ;;  %2368 = vrcp.f32 %v1450_v8  ;;  %v1857_v22 = vand.u32 2147483648, %v1450_v8  ;;  %v1855_v23 = vand.u32 2147483647, %v1450_v8  ;;  %vm1851_vm10 = vweird.f32 %v1450_v8 }
 0x595   :  { %v1834_v34 = vmul.f32 %v2363_v6, %v1833_v51 }
 0x596   :  { %v1858_v0 = vor.u32 1.1754944e-38, %v1857_v22  ;;  %vm1856_vm12 = vcmp.eq.f32.partialorder %v1855_v23, 8.507059e+37 }
 0x597   :  { %v1835_v59 = vadd.f32 %v2363_v6, %v1834_v34  ;;  %v2367_v21 = vpop.eup %2366 }
 0x598   :  { %v1451_v14 = vadd.f32 1.0, %v2367_v21 }
 0x599   :  { %v1839_v1 = vsel %vm1838_vm2, %v2363_v6, %v1835_v59 }
 0x59a   :  { %v2369_v50 = vpop.eup %2368  ;;  %v1844_v55 = vsel %vm1841_vm8, %v1843_v41, %v1839_v1  ;;  %2370 = vrcp.f32 %v1451_v14  ;;  %v1872_v58 = vand.u32 2147483648, %v1451_v14  ;;  %v1870_v33 = vand.u32 2147483647, %v1451_v14 }
 0x59b   :  { %v1966_v4 = vsel %vm3049_vm7, %v2896_v30, %v1844_v55  ;;  %v1847_v48 = vmul.f32 %v2369_v50, %v1450_v8  ;;  %vm1852_vm9 = vweird.f32 %v2369_v50  ;;  %vm1866_vm14 = vweird.f32 %v1451_v14 }
 0x59c   :  { %1998 = vst [vmem:[#allocation2 + $0xc8] sm:$0xff] %v1966_v4  ;;  %vm1853_vm11 = vmor %vm1851_vm10, %vm1852_vm9  ;;  %v1873_v16 = vor.u32 1.1754944e-38, %v1872_v58  ;;  %vm1871_vm0 = vcmp.eq.f32.partialorder %v1870_v33, 8.507059e+37 }
 0x59d   :  { %v1848_v49 = vsub.f32 1.0, %v1847_v48 }
 0x59f   :  { %v1849_v24 = vmul.f32 %v2369_v50, %v1848_v49 }
 0x5a0   :  { %v2371_v26 = vpop.eup %2370 }
 0x5a1   :  { %v1850_v52 = vadd.f32 %v2369_v50, %v1849_v24  ;;  %v1862_v28 = vmul.f32 %v2371_v26, %v1451_v14  ;;  %vm1867_vm13 = vweird.f32 %v2371_v26 }
 0x5a2   :  { %vm1868_vm15 = vmor %vm1866_vm14, %vm1867_vm13 }
 0x5a3   :  { %v1854_v39 = vsel %vm1853_vm11, %v2369_v50, %v1850_v52  ;;  %v1863_v42 = vsub.f32 1.0, %v1862_v28 }
 0x5a4   :  { %v1859_v63 = vsel %vm1856_vm12, %v1858_v0, %v1854_v39  ;;  %v1318_v5 = vpop.f32.mrf.mxu3 }
 0x5a5   :  { %v1967_v30 = vsel %vm3049_vm7, %v2942_v32, %v1859_v63  ;;  %v1864_v46 = vmul.f32 %v2371_v26, %v1863_v42  ;;  %v1319_v40 = vadd.f32 %v3172_v29, %v1318_v5 }
 0x5a6   :  { %1999 = vst [vmem:[#allocation2 + $0xd0] sm:$0xff] %v1967_v30 }
 0x5a7   :  { %v1865_v54 = vadd.f32 %v2371_v26, %v1864_v46  ;;  %v2163_v27 = vmul.f32 -1.442695, %v1319_v40 }
 0x5a9   :  { %v1869_v47 = vsel %vm1868_vm15, %v2371_v26, %v1865_v54  ;;  %2372 = vpow2.f32 %v2163_v27 }
 0x5aa   :  { %v1874_v56 = vsel %vm1871_vm0, %v1873_v16, %v1869_v47 }
 0x5ab   :  { %v1968_v32 = vsel %vm3049_vm7, %v2946_v35, %v1874_v56 }
 0x5ac   :  { %2000 = vst [vmem:[#allocation2 + $0xd8] sm:$0xff] %v1968_v32  ;;  %v1320_v11 = vpop.f32.mrf.mxu3 }
 0x5ad   :  { %v1321_v57 = vadd.f32 %v3172_v29, %v1320_v11 }
 0x5af   :  { %v2373_v43 = vpop.eup %2372  ;;  %v2164_v60 = vmul.f32 -1.442695, %v1321_v57 }
 0x5b0   :  { %v1452_v44 = vadd.f32 1.0, %v2373_v43 }
 0x5b1   :  { %2374 = vpow2.f32 %v2164_v60 }
 0x5b2   :  { %2376 = vrcp.f32 %v1452_v44  ;;  %v1887_v3 = vand.u32 2147483648, %v1452_v44  ;;  %v1885_v6 = vand.u32 2147483647, %v1452_v44  ;;  %vm1881_vm3 = vweird.f32 %v1452_v44 }
 0x5b4   :  { %v1888_v45 = vor.u32 1.1754944e-38, %v1887_v3  ;;  %vm1886_vm5 = vcmp.eq.f32.partialorder %v1885_v6, 8.507059e+37 }
 0x5b7   :  { %v2375_v17 = vpop.eup %2374 }
 0x5b8   :  { %v2377_v62 = vpop.eup %2376  ;;  %v1453_v38 = vadd.f32 1.0, %v2375_v17 }
 0x5b9   :  { %v1877_v37 = vmul.f32 %v2377_v62, %v1452_v44  ;;  %vm1882_vm1 = vweird.f32 %v2377_v62 }
 0x5ba   :  { %2378 = vrcp.f32 %v1453_v38  ;;  %vm1883_vm4 = vmor %vm1881_vm3, %vm1882_vm1  ;;  %v1902_v13 = vand.u32 2147483648, %v1453_v38  ;;  %v1900_v61 = vand.u32 2147483647, %v1453_v38  ;;  %vm1896_vm2 = vweird.f32 %v1453_v38 }
 0x5bb   :  { %v1878_v2 = vsub.f32 1.0, %v1877_v37 }
 0x5bc   :  { %v1903_v31 = vor.u32 1.1754944e-38, %v1902_v13  ;;  %vm1901_vm9 = vcmp.eq.f32.partialorder %v1900_v61, 8.507059e+37 }
 0x5bd   :  { %v1879_v25 = vmul.f32 %v2377_v62, %v1878_v2 }
 0x5bf   :  { %v1880_v35 = vadd.f32 %v2377_v62, %v1879_v25 }
 0x5c0   :  { %v2379_v7 = vpop.eup %2378 }
 0x5c1   :  { %v1884_v15 = vsel %vm1883_vm4, %v2377_v62, %v1880_v35  ;;  %v1892_v20 = vmul.f32 %v2379_v7, %v1453_v38  ;;  %vm1897_vm6 = vweird.f32 %v2379_v7 }
 0x5c2   :  { %v1889_v36 = vsel %vm1886_vm5, %v1888_v45, %v1884_v15  ;;  %vm1898_vm8 = vmor %vm1896_vm2, %vm1897_vm6 }
 0x5c3   :  { %v1969_v18 = vsel %vm3049_vm7, %v2928_v9, %v1889_v36  ;;  %v1893_v8 = vsub.f32 1.0, %v1892_v20 }
 0x5c4   :  { %2001 = vst [vmem:[#allocation2 + $0xe0] sm:$0xff] %v1969_v18 }
 0x5c5   :  { %v1894_v51 = vmul.f32 %v2379_v7, %v1893_v8 }
 0x5c7   :  { %v1895_v34 = vadd.f32 %v2379_v7, %v1894_v51 }
 0x5c9   :  { %v1899_v59 = vsel %vm1898_vm8, %v2379_v7, %v1895_v34 }
 0x5ca   :  { %v1904_v21 = vsel %vm1901_vm9, %v1903_v31, %v1899_v59 }
 0x5cb   :  { %v1970_v41 = vsel %vm3049_vm7, %v2968_v19, %v1904_v21 }
 0x5cc   :  { %2002 = vst [vmem:[#allocation2 + $0xe8] sm:$0xff] %v1970_v41 }
 0x609   :  { %v1323_v1 = vpop.f32.mrf.mxu3 }
 0x60a   :  { %v1324_v9 = vadd.f32 %v3172_v29, %v1323_v1 }
 0x60c   :  { %v2165_v14 = vmul.f32 -1.442695, %v1324_v9 }
 0x60e   :  { %2380 = vpow2.f32 %v2165_v14 }
 0x611   :  { %v1325_v50 = vpop.f32.mrf.mxu3 }
 0x612   :  { %v1326_v55 = vadd.f32 %v3172_v29, %v1325_v50 }
 0x614   :  { %v2381_v4 = vpop.eup %2380  ;;  %v2166_v48 = vmul.f32 -1.442695, %v1326_v55 }
 0x615   :  { %v1454_v49 = vadd.f32 1.0, %v2381_v4 }
 0x616   :  { %2382 = vpow2.f32 %v2166_v48 }
 0x617   :  { %2384 = vrcp.f32 %v1454_v49  ;;  %v1917_v52 = vand.u32 2147483648, %v1454_v49  ;;  %v1915_v28 = vand.u32 2147483647, %v1454_v49  ;;  %vm1911_vm11 = vweird.f32 %v1454_v49 }
 0x619   :  { %v1918_v29 = vor.u32 1.1754944e-38, %v1917_v52  ;;  %vm1916_vm13 = vcmp.eq.f32.partialorder %v1915_v28, 8.507059e+37 }
 0x61c   :  { %v2383_v22 = vpop.eup %2382 }
 0x61d   :  { %v2385_v24 = vpop.eup %2384  ;;  %v1455_v23 = vadd.f32 1.0, %v2383_v22 }
 0x61e   :  { %v1907_v26 = vmul.f32 %v2385_v24, %v1454_v49  ;;  %vm1912_vm10 = vweird.f32 %v2385_v24 }
 0x61f   :  { %2386 = vrcp.f32 %v1455_v23  ;;  %vm1913_vm12 = vmor %vm1911_vm11, %vm1912_vm10  ;;  %v1932_v33 = vand.u32 2147483648, %v1455_v23  ;;  %v1930_v54 = vand.u32 2147483647, %v1455_v23  ;;  %vm1926_vm15 = vweird.f32 %v1455_v23 }
 0x620   :  { %v1908_v19 = vsub.f32 1.0, %v1907_v26 }
 0x621   :  { %v1933_v16 = vor.u32 1.1754944e-38, %v1932_v33  ;;  %vm1931_vm1 = vcmp.eq.f32.partialorder %v1930_v54, 8.507059e+37 }
 0x622   :  { %v1909_v0 = vmul.f32 %v2385_v24, %v1908_v19 }
 0x624   :  { %v1910_v39 = vadd.f32 %v2385_v24, %v1909_v0 }
 0x625   :  { %v2387_v63 = vpop.eup %2386 }
 0x626   :  { %v1914_v42 = vsel %vm1913_vm12, %v2385_v24, %v1910_v39  ;;  %v1922_v30 = vmul.f32 %v2387_v63, %v1455_v23  ;;  %vm1927_vm14 = vweird.f32 %v2387_v63 }
 0x627   :  { %v1919_v58 = vsel %vm1916_vm13, %v1918_v29, %v1914_v42  ;;  %vm1928_vm0 = vmor %vm1926_vm15, %vm1927_vm14 }
 0x628   :  { %v1971_v5 = vsel %vm3049_vm7, %v2990_v10, %v1919_v58  ;;  %v1923_v46 = vsub.f32 1.0, %v1922_v30 }
 0x629   :  { %2003 = vst [vmem:[#allocation2 + $0xf0] sm:$0xff] %v1971_v5 }
 0x62a   :  { %v1924_v40 = vmul.f32 %v2387_v63, %v1923_v46 }
 0x62c   :  { %v1925_v27 = vadd.f32 %v2387_v63, %v1924_v40 }
 0x62e   :  { %v1929_v47 = vsel %vm1928_vm0, %v2387_v63, %v1925_v27 }
 0x62f   :  { %v1934_v10 = vsel %vm1931_vm1, %v1933_v16, %v1929_v47 }
 0x630   :  { %v1972_v56 = vsel %vm3049_vm7, %v3006_v53, %v1934_v10 }
 0x631   :  { %2004 = vst [vmem:[#allocation2 + $0xf8] sm:$0xff] %v1972_v56 }
 0x632   :  { %2017 = dma.vmem_to_hbm [thread:$0]  %s2010_s15, 4096, %s2012_s18, [#allocation3], %s2420_s0, %s2420_s0, %s2421_s19  }
 0x633   :  { %2415 = dma.done.wait [#allocation3], 4096  }
 0x634   :  { %2416 = vsyncadd [#allocation3], 4294963200 }
 0x635   :  { %2022 = vsyncpa [#allocation3], 1 }

</bundles_post_ra>
